<compile_context>
chip_gen: v7x
topology: tpu7x:2x2x1
jax: 0.10.0
libtpu: 0.0.40
codegen_flags: <defaults>
</compile_context>

<pallas_src>
import functools

import jax
import jax.numpy as jnp
from jax.experimental import pallas as pl
from jax.experimental.pallas import tpu as pltpu


# ----------------------------------------------------------------------------
# helpers
# ----------------------------------------------------------------------------
def _round_up(x, m):
    return (x + m - 1) // m * m


def _num_tensorcores_per_device():
    """Schedulable TensorCores per Pallas device: 2 on v7x (and megacore
    v4/v5p), 1 on v5e/v6e. Conservative fallback = 1 (no forced grid split)."""
    try:
        kind = getattr(jax.devices()[0], "device_kind", "").lower()
        if any(tag in kind for tag in ("v4", "v5p", "7")):
            return 2
        return 1
    except Exception:
        return 1


def _choose_batch_tile(batch, num_cores, max_tile=512):
    """Largest useful batch tile that divides the sublane-padded batch.
    Prefers 256-row multiples (MXU-friendly), then 128, then 8. On multi-core
    chips aims for >=2 grid steps so each TensorCore gets a tile."""
    b_pad = _round_up(max(batch, 1), 8)
    if num_cores > 1 and b_pad >= 16:
        upper = min(max_tile, b_pad // num_cores)
    else:
        upper = min(max_tile, b_pad)
    upper = max(upper, 8)

    def best_divisor(align):
        t = (upper // align) * align
        while t >= align:
            if b_pad % t == 0:
                return t
            t -= align
        return 0

    for align in (256, 128, 8):
        t = best_divisor(align)
        if t:
            return t, b_pad
    return b_pad, b_pad


def _vmem_estimate(tile, d_in, h_pad, out_pad, out_itemsize):
    """Rough per-step VMEM footprint (bytes) with single-buffered weights."""
    weights = 2 * (d_in * h_pad + 2 * h_pad * h_pad + h_pad * out_pad)   # bf16
    biases = 4 * (3 * h_pad + out_pad)                                    # f32
    io = 2 * tile * (d_in * 4 + out_pad * out_itemsize)    # dbl-buffered obs/out
    act = tile * h_pad * (4 + 4 + 2)                        # f32 temps + bf16 copy
    return weights + biases + io + act


# ----------------------------------------------------------------------------
# kernel
# ----------------------------------------------------------------------------
def _actor_kernel(obs_ref,
                  w1_ref, b1_ref,
                  w2_ref, b2_ref,
                  w3_ref, b3_ref,
                  wh_ref, bh_ref,
                  out_ref,
                  *, action_dims, log_std_min, log_std_max):
    """3 hidden matmuls + fused (mean|log_std) head + activations, one tile."""
    x = obs_ref[...].astype(jnp.bfloat16)

    h = jnp.dot(x, w1_ref[...], preferred_element_type=jnp.float32) + b1_ref[...]
    h = jnp.maximum(h, 0.0).astype(jnp.bfloat16)

    h = jnp.dot(h, w2_ref[...], preferred_element_type=jnp.float32) + b2_ref[...]
    h = jnp.maximum(h, 0.0).astype(jnp.bfloat16)

    h = jnp.dot(h, w3_ref[...], preferred_element_type=jnp.float32) + b3_ref[...]
    h = jnp.maximum(h, 0.0).astype(jnp.bfloat16)

    # Fused head: lanes [0, A) = mean, lanes [A, 2A) = log_std, rest zero-pad.
    head = jnp.dot(h, wh_ref[...], preferred_element_type=jnp.float32) + bh_ref[...]

    # clip+exp only on the log_std lanes via a lane mask (full-width VPU/EUP
    # work, no sub-128 slicing inside the kernel).
    lane = jax.lax.broadcasted_iota(jnp.int32, head.shape, 1)
    is_std = jnp.logical_and(lane >= action_dims, lane < 2 * action_dims)
    std_vals = jnp.exp(jnp.clip(head, log_std_min, log_std_max))
    out_ref[...] = jnp.where(is_std, std_vals, head).astype(out_ref.dtype)


# ----------------------------------------------------------------------------
# parameter prep (once per model): pad H to 128-multiple, fuse + pad heads,
# cast matmul weights to bf16 (biases stay f32; they add to the f32 accumulator)
# ----------------------------------------------------------------------------
def prepare_params(params, *, compute_dtype=jnp.bfloat16):
    (w1, b1), (w2, b2), (w3, b3), (wm, bm), (ws, bs) = params
    d_in, hidden = w1.shape
    action_dims = wm.shape[1]
    h_pad = _round_up(hidden, 128)
    out_pad = _round_up(2 * action_dims, 128)

    def pad_w(w, rows, cols):
        return jnp.pad(w, ((0, rows - w.shape[0]), (0, cols - w.shape[1])))

    def pad_b(b, cols):
        b = b.reshape(1, -1)
        return jnp.pad(b, ((0, 0), (0, cols - b.shape[1])))

    w1p = pad_w(w1, d_in, h_pad).astype(compute_dtype)
    w2p = pad_w(w2, h_pad, h_pad).astype(compute_dtype)
    w3p = pad_w(w3, h_pad, h_pad).astype(compute_dtype)
    wh = jnp.concatenate([wm, ws], axis=1)                     # (H, 2A)
    whp = pad_w(wh, h_pad, out_pad).astype(compute_dtype)

    b1p = pad_b(b1, h_pad).astype(jnp.float32)
    b2p = pad_b(b2, h_pad).astype(jnp.float32)
    b3p = pad_b(b3, h_pad).astype(jnp.float32)
    bh = jnp.concatenate([bm.reshape(1, -1), bs.reshape(1, -1)], axis=1)
    bhp = pad_b(bh, out_pad).astype(jnp.float32)

    return (w1p, b1p, w2p, b2p, w3p, b3p, whp, bhp)


# ----------------------------------------------------------------------------
# forward wrapper
# ----------------------------------------------------------------------------
def tanh_gaussian_actor_forward(obs, prepared, action_dims,
                                log_std_min, log_std_max,
                                *, max_batch_tile=512,
                                out_dtype=jnp.float32):
    # out_dtype=jnp.bfloat16 halves HBM writeback of the (b, 128) slab for
    # large batches; default f32 keeps tight numerics for small/medium B.
    w1, b1, w2, b2, w3, b3, wh, bh = prepared
    batch, d_in = obs.shape
    h_pad = w1.shape[1]
    out_pad = wh.shape[1]
    out_itemsize = jnp.dtype(out_dtype).itemsize

    num_cores = _num_tensorcores_per_device()
    budget = 16 * (1 << 20)   # safe under scoped-VMEM defaults on v5e/v6e/v7x

    tile, b_pad = _choose_batch_tile(batch, num_cores, max_batch_tile)
    while tile > 8 and _vmem_estimate(tile, d_in, h_pad, out_pad, out_itemsize) > budget:
        tile, b_pad = _choose_batch_tile(batch, num_cores, max(tile // 2, 8))

    vmem_limit = None
    est = _vmem_estimate(tile, d_in, h_pad, out_pad, out_itemsize)
    if est > budget:
        # Very large hidden sizes: weights alone exceed the scoped default —
        # raise the limit explicitly with headroom (capped at v7x physical VMEM).
        vmem_limit = min(int(est * 1.25) + (1 << 20), 64 * (1 << 20))

    # Only pad the batch when it is not already sublane-aligned (tile always
    # divides the padded batch, so no jnp.pad on the common power-of-two path).
    if b_pad != batch:
        obs = jnp.pad(obs, ((0, b_pad - batch), (0, 0)))
    grid = (b_pad // tile,)

    kernel = functools.partial(_actor_kernel,
                               action_dims=int(action_dims),
                               log_std_min=float(log_std_min),
                               log_std_max=float(log_std_max))

    def run(single_buffer_weights):
        def rep(shape):
            # Grid-constant weights/biases: index_map never changes, so a
            # single buffer is enough (double-buffering them is VMEM waste).
            if single_buffer_weights:
                return pl.BlockSpec(shape, lambda i: (0, 0),
                                    pipeline_mode=pl.Buffered(1))
            return pl.BlockSpec(shape, lambda i: (0, 0))

        cp_kwargs = dict(dimension_semantics=("parallel",))
        if vmem_limit is not None:
            cp_kwargs["vmem_limit_bytes"] = vmem_limit

        out = pl.pallas_call(
            kernel,
            out_shape=jax.ShapeDtypeStruct((b_pad, out_pad), out_dtype),
            grid=grid,
            in_specs=[
                pl.BlockSpec((tile, d_in), lambda i: (i, 0)),        # obs tile
                rep((d_in, h_pad)), rep((1, h_pad)),                 # fc1
                rep((h_pad, h_pad)), rep((1, h_pad)),                # fc2
                rep((h_pad, h_pad)), rep((1, h_pad)),                # fc3
                rep((h_pad, out_pad)), rep((1, out_pad)),            # fused head
            ],
            out_specs=pl.BlockSpec((tile, out_pad), lambda i: (i, 0)),
            compiler_params=pltpu.CompilerParams(**cp_kwargs),
        )(obs, w1, b1, w2, b2, w3, b3, wh, bh)
        return jax.block_until_ready(out)

    try:
        out = run(True)
    except Exception:
        # Fallback for jax versions without BlockSpec pipeline_mode=Buffered(1).
        out = run(False)

    mean = out[:batch, :action_dims].astype(jnp.float32)
    std = out[:batch, action_dims:2 * action_dims].astype(jnp.float32)
    return mean, std


# ----------------------------------------------------------------------------
# init + references
# ----------------------------------------------------------------------------
def init_params(key, input_dims, hidden_size, action_dims):
    """PyTorch-Linear-style init; weights stored transposed (in, out), f32."""
    def linear(key, fan_in, fan_out):
        kw, kb = jax.random.split(key)
        bound = 1.0 / jnp.sqrt(fan_in)
        w = jax.random.uniform(kw, (fan_in, fan_out), jnp.float32, -bound, bound)
        b = jax.random.uniform(kb, (1, fan_out), jnp.float32, -bound, bound)
        return w, b

    keys = jax.random.split(key, 5)
    return (
        linear(keys[0], input_dims, hidden_size),
        linear(keys[1], hidden_size, hidden_size),
        linear(keys[2], hidden_size, hidden_size),
        linear(keys[3], hidden_size, action_dims),
        linear(keys[4], hidden_size, action_dims),
    )


def reference_forward_prepared(obs, prepared, action_dims, log_std_min, log_std_max):
    """Pure-JAX reference that mimics the kernel's exact bf16/f32 casts."""
    w1, b1, w2, b2, w3, b3, wh, bh = prepared
    h = obs.astype(jnp.bfloat16)
    h = jnp.maximum(jnp.dot(h, w1, preferred_element_type=jnp.float32) + b1, 0.0)
    h = jnp.maximum(jnp.dot(h.astype(jnp.bfloat16), w2,
                            preferred_element_type=jnp.float32) + b2, 0.0)
    h = jnp.maximum(jnp.dot(h.astype(jnp.bfloat16), w3,
                            preferred_element_type=jnp.float32) + b3, 0.0)
    head = jnp.dot(h.astype(jnp.bfloat16), wh,
                   preferred_element_type=jnp.float32) + bh
    mean = head[:, :action_dims]
    log_std = jnp.clip(head[:, action_dims:2 * action_dims], log_std_min, log_std_max)
    return mean, jnp.exp(log_std)


def reference_forward_f32(obs, params, log_std_min, log_std_max):
    """Full-precision reference of the original PyTorch math."""
    (w1, b1), (w2, b2), (w3, b3), (wm, bm), (ws, bs) = params
    x = jax.nn.relu(obs @ w1 + b1)
    x = jax.nn.relu(x @ w2 + b2)
    x = jax.nn.relu(x @ w3 + b3)
    mean = x @ wm + bm
    log_std = jnp.clip(x @ ws + bs, log_std_min, log_std_max)
    return mean, jnp.exp(log_std)


if __name__ == "__main__":
    batch = 64
    input_dims = 16
    hidden_size = 32
    action_dims = 4
    log_std_min = -20.0
    log_std_max = 2.0

    key = jax.random.PRNGKey(0)
    k_obs, k_params = jax.random.split(key)

    obs = jax.random.normal(k_obs, (batch, input_dims), jnp.float32)
    raw_params = init_params(k_params, input_dims, hidden_size, action_dims)
    prepared = prepare_params(raw_params)

    mean, std = tanh_gaussian_actor_forward(
        obs, prepared, action_dims, log_std_min, log_std_max)
    jax.block_until_ready((mean, std))

    assert mean.shape == (batch, action_dims)
    assert std.shape == (batch, action_dims)

    # Exact-mimic reference (same bf16/f32 casting) -> tight tolerance.
    ref_mean, ref_std = reference_forward_prepared(
        obs, prepared, action_dims, log_std_min, log_std_max)
    assert jnp.allclose(mean, ref_mean, atol=1e-3, rtol=1e-3)
    assert jnp.allclose(std, ref_std, atol=1e-3, rtol=1e-3)

    # Full-f32 reference of the original module math -> loose tolerance
    # (differences come only from bf16 weight/activation rounding).
    f32_mean, f32_std = reference_forward_f32(
        obs, raw_params, log_std_min, log_std_max)
    assert jnp.allclose(mean, f32_mean, atol=5e-2, rtol=5e-2)
    assert jnp.allclose(std, f32_std, atol=5e-2, rtol=5e-2)

    print("KERNEL_OK")
</pallas_src>

<mosaic_0001>
module attributes {stable_mosaic.version = 11 : i64} {
  func.func @_actor_kernel(%arg0: i32, %arg1: memref<64x16xf32, #tpu.memory_space<vmem>>, %arg2: memref<16x128xbf16, #tpu.memory_space<vmem>>, %arg3: memref<1x128xf32, #tpu.memory_space<vmem>>, %arg4: memref<128x128xbf16, #tpu.memory_space<vmem>>, %arg5: memref<1x128xf32, #tpu.memory_space<vmem>>, %arg6: memref<128x128xbf16, #tpu.memory_space<vmem>>, %arg7: memref<1x128xf32, #tpu.memory_space<vmem>>, %arg8: memref<128x128xbf16, #tpu.memory_space<vmem>>, %arg9: memref<1x128xf32, #tpu.memory_space<vmem>>, %arg10: memref<64x128xf32, #tpu.memory_space<vmem>>) attributes {dimension_semantics = [#tpu.dimension_semantics<parallel>], iteration_bounds = array<i64: 1>, scalar_prefetch = 0 : i64, scratch_operands = 0 : i64, tpu.core_type = #tpu.core_type<tc>, window_params = [{transform_indices = @transform_0, window_bounds = array<i64: 64, 16>}, {pipeline_mode = #tpu.pipeline_mode<synchronous>, transform_indices = @transform_1, window_bounds = array<i64: 16, 128>}, {pipeline_mode = #tpu.pipeline_mode<synchronous>, transform_indices = @transform_2, window_bounds = array<i64: 1, 128>}, {pipeline_mode = #tpu.pipeline_mode<synchronous>, transform_indices = @transform_3, window_bounds = array<i64: 128, 128>}, {pipeline_mode = #tpu.pipeline_mode<synchronous>, transform_indices = @transform_4, window_bounds = array<i64: 1, 128>}, {pipeline_mode = #tpu.pipeline_mode<synchronous>, transform_indices = @transform_5, window_bounds = array<i64: 128, 128>}, {pipeline_mode = #tpu.pipeline_mode<synchronous>, transform_indices = @transform_6, window_bounds = array<i64: 1, 128>}, {pipeline_mode = #tpu.pipeline_mode<synchronous>, transform_indices = @transform_7, window_bounds = array<i64: 128, 128>}, {pipeline_mode = #tpu.pipeline_mode<synchronous>, transform_indices = @transform_8, window_bounds = array<i64: 1, 128>}, {transform_indices = @transform_9, window_bounds = array<i64: 64, 128>}]} {
    %c0 = arith.constant 0 : index
    %c0_0 = arith.constant 0 : index
    %0 = vector.load %arg1[%c0, %c0_0] : memref<64x16xf32, #tpu.memory_space<vmem>>, vector<64x16xf32>
    %1 = arith.truncf %0 : vector<64x16xf32> to vector<64x16xbf16>
    %c0_1 = arith.constant 0 : index
    %c0_2 = arith.constant 0 : index
    %2 = vector.load %arg2[%c0_1, %c0_2] : memref<16x128xbf16, #tpu.memory_space<vmem>>, vector<16x128xbf16>
    %cst = arith.constant dense<0.000000e+00> : vector<64x128xf32>
    %3 = tpu.matmul %1, %2, %cst {dimension_numbers = #tpu.dot_dimension_numbers<[1], [0], [0], [1], [0, 0, 1, 1], [], []>} : vector<64x16xbf16>, vector<16x128xbf16>, vector<64x128xf32> -> vector<64x128xf32>
    %c0_3 = arith.constant 0 : index
    %c0_4 = arith.constant 0 : index
    %4 = vector.load %arg3[%c0_3, %c0_4] : memref<1x128xf32, #tpu.memory_space<vmem>>, vector<1x128xf32>
    %5 = vector.broadcast %4 : vector<1x128xf32> to vector<64x128xf32>
    %6 = arith.addf %3, %5 : vector<64x128xf32>
    %cst_5 = arith.constant 0.000000e+00 : f32
    %7 = vector.broadcast %cst_5 : f32 to vector<64x128xf32>
    %8 = arith.maximumf %6, %7 : vector<64x128xf32>
    %9 = arith.truncf %8 : vector<64x128xf32> to vector<64x128xbf16>
    %c0_6 = arith.constant 0 : index
    %c0_7 = arith.constant 0 : index
    %10 = vector.load %arg4[%c0_6, %c0_7] : memref<128x128xbf16, #tpu.memory_space<vmem>>, vector<128x128xbf16>
    %cst_8 = arith.constant dense<0.000000e+00> : vector<64x128xf32>
    %11 = tpu.matmul %9, %10, %cst_8 {dimension_numbers = #tpu.dot_dimension_numbers<[1], [0], [0], [1], [0, 0, 1, 1], [], []>} : vector<64x128xbf16>, vector<128x128xbf16>, vector<64x128xf32> -> vector<64x128xf32>
    %c0_9 = arith.constant 0 : index
    %c0_10 = arith.constant 0 : index
    %12 = vector.load %arg5[%c0_9, %c0_10] : memref<1x128xf32, #tpu.memory_space<vmem>>, vector<1x128xf32>
    %13 = vector.broadcast %12 : vector<1x128xf32> to vector<64x128xf32>
    %14 = arith.addf %11, %13 : vector<64x128xf32>
    %cst_11 = arith.constant 0.000000e+00 : f32
    %15 = vector.broadcast %cst_11 : f32 to vector<64x128xf32>
    %16 = arith.maximumf %14, %15 : vector<64x128xf32>
    %17 = arith.truncf %16 : vector<64x128xf32> to vector<64x128xbf16>
    %c0_12 = arith.constant 0 : index
    %c0_13 = arith.constant 0 : index
    %18 = vector.load %arg6[%c0_12, %c0_13] : memref<128x128xbf16, #tpu.memory_space<vmem>>, vector<128x128xbf16>
    %cst_14 = arith.constant dense<0.000000e+00> : vector<64x128xf32>
    %19 = tpu.matmul %17, %18, %cst_14 {dimension_numbers = #tpu.dot_dimension_numbers<[1], [0], [0], [1], [0, 0, 1, 1], [], []>} : vector<64x128xbf16>, vector<128x128xbf16>, vector<64x128xf32> -> vector<64x128xf32>
    %c0_15 = arith.constant 0 : index
    %c0_16 = arith.constant 0 : index
    %20 = vector.load %arg7[%c0_15, %c0_16] : memref<1x128xf32, #tpu.memory_space<vmem>>, vector<1x128xf32>
    %21 = vector.broadcast %20 : vector<1x128xf32> to vector<64x128xf32>
    %22 = arith.addf %19, %21 : vector<64x128xf32>
    %cst_17 = arith.constant 0.000000e+00 : f32
    %23 = vector.broadcast %cst_17 : f32 to vector<64x128xf32>
    %24 = arith.maximumf %22, %23 : vector<64x128xf32>
    %25 = arith.truncf %24 : vector<64x128xf32> to vector<64x128xbf16>
    %c0_18 = arith.constant 0 : index
    %c0_19 = arith.constant 0 : index
    %26 = vector.load %arg8[%c0_18, %c0_19] : memref<128x128xbf16, #tpu.memory_space<vmem>>, vector<128x128xbf16>
    %cst_20 = arith.constant dense<0.000000e+00> : vector<64x128xf32>
    %27 = tpu.matmul %25, %26, %cst_20 {dimension_numbers = #tpu.dot_dimension_numbers<[1], [0], [0], [1], [0, 0, 1, 1], [], []>} : vector<64x128xbf16>, vector<128x128xbf16>, vector<64x128xf32> -> vector<64x128xf32>
    %c0_21 = arith.constant 0 : index
    %c0_22 = arith.constant 0 : index
    %28 = vector.load %arg9[%c0_21, %c0_22] : memref<1x128xf32, #tpu.memory_space<vmem>>, vector<1x128xf32>
    %29 = vector.broadcast %28 : vector<1x128xf32> to vector<64x128xf32>
    %30 = arith.addf %27, %29 : vector<64x128xf32>
    %31 = tpu.iota {dimensions = array<i32: 1>} : vector<64x128xi32>
    %c4_i32 = arith.constant 4 : i32
    %32 = vector.broadcast %c4_i32 : i32 to vector<64x128xi32>
    %33 = arith.cmpi sge, %31, %32 : vector<64x128xi32>
    %c8_i32 = arith.constant 8 : i32
    %34 = vector.broadcast %c8_i32 : i32 to vector<64x128xi32>
    %35 = arith.cmpi slt, %31, %34 : vector<64x128xi32>
    %36 = arith.andi %33, %35 : vector<64x128xi1>
    %cst_23 = arith.constant -2.000000e+01 : f32
    %cst_24 = arith.constant 2.000000e+00 : f32
    %37 = vector.broadcast %cst_23 : f32 to vector<64x128xf32>
    %38 = arith.maximumf %37, %30 : vector<64x128xf32>
    %39 = vector.broadcast %cst_24 : f32 to vector<64x128xf32>
    %40 = arith.minimumf %39, %38 : vector<64x128xf32>
    %41 = math.exp %40 : vector<64x128xf32>
    %42 = arith.select %36, %41, %30 : vector<64x128xi1>, vector<64x128xf32>
    %c0_25 = arith.constant 0 : index
    %c0_26 = arith.constant 0 : index
    %43 = vector.load %arg10[%c0_25, %c0_26] : memref<64x128xf32, #tpu.memory_space<vmem>>, vector<64x128xf32>
    tpu.vector_store %arg10[%c0_25, %c0_26], %42 {strides = array<i32>} : memref<64x128xf32, #tpu.memory_space<vmem>>, vector<64x128xf32>,
    return
  }
  func.func @transform_0(%arg0: i32) -> (i32, i32) {
    %c0_i32 = arith.constant 0 : i32
    %c0_i32_0 = arith.constant 0 : i32
    return %arg0, %c0_i32 : i32, i32
  }
  func.func @transform_1(%arg0: i32) -> (i32, i32) {
    %c0_i32 = arith.constant 0 : i32
    %c0_i32_0 = arith.constant 0 : i32
    %c0_i32_1 = arith.constant 0 : i32
    return %c0_i32, %c0_i32_0 : i32, i32
  }
  func.func @transform_2(%arg0: i32) -> (i32, i32) {
    %c0_i32 = arith.constant 0 : i32
    %c0_i32_0 = arith.constant 0 : i32
    %c0_i32_1 = arith.constant 0 : i32
    return %c0_i32, %c0_i32_0 : i32, i32
  }
  func.func @transform_3(%arg0: i32) -> (i32, i32) {
    %c0_i32 = arith.constant 0 : i32
    %c0_i32_0 = arith.constant 0 : i32
    %c0_i32_1 = arith.constant 0 : i32
    return %c0_i32, %c0_i32_0 : i32, i32
  }
  func.func @transform_4(%arg0: i32) -> (i32, i32) {
    %c0_i32 = arith.constant 0 : i32
    %c0_i32_0 = arith.constant 0 : i32
    %c0_i32_1 = arith.constant 0 : i32
    return %c0_i32, %c0_i32_0 : i32, i32
  }
  func.func @transform_5(%arg0: i32) -> (i32, i32) {
    %c0_i32 = arith.constant 0 : i32
    %c0_i32_0 = arith.constant 0 : i32
    %c0_i32_1 = arith.constant 0 : i32
    return %c0_i32, %c0_i32_0 : i32, i32
  }
  func.func @transform_6(%arg0: i32) -> (i32, i32) {
    %c0_i32 = arith.constant 0 : i32
    %c0_i32_0 = arith.constant 0 : i32
    %c0_i32_1 = arith.constant 0 : i32
    return %c0_i32, %c0_i32_0 : i32, i32
  }
  func.func @transform_7(%arg0: i32) -> (i32, i32) {
    %c0_i32 = arith.constant 0 : i32
    %c0_i32_0 = arith.constant 0 : i32
    %c0_i32_1 = arith.constant 0 : i32
    return %c0_i32, %c0_i32_0 : i32, i32
  }
  func.func @transform_8(%arg0: i32) -> (i32, i32) {
    %c0_i32 = arith.constant 0 : i32
    %c0_i32_0 = arith.constant 0 : i32
    %c0_i32_1 = arith.constant 0 : i32
    return %c0_i32, %c0_i32_0 : i32, i32
  }
  func.func @transform_9(%arg0: i32) -> (i32, i32) {
    %c0_i32 = arith.constant 0 : i32
    %c0_i32_0 = arith.constant 0 : i32
    return %arg0, %c0_i32 : i32, i32
  }
}

module attributes {stable_mosaic.version = 11 : i64} {
  func.func @_actor_kernel(%arg0: i32, %arg1: memref<64x16xf32, #tpu.memory_space<vmem>>, %arg2: memref<16x128xbf16, #tpu.memory_space<vmem>>, %arg3: memref<1x128xf32, #tpu.memory_space<vmem>>, %arg4: memref<128x128xbf16, #tpu.memory_space<vmem>>, %arg5: memref<1x128xf32, #tpu.memory_space<vmem>>, %arg6: memref<128x128xbf16, #tpu.memory_space<vmem>>, %arg7: memref<1x128xf32, #tpu.memory_space<vmem>>, %arg8: memref<128x128xbf16, #tpu.memory_space<vmem>>, %arg9: memref<1x128xf32, #tpu.memory_space<vmem>>, %arg10: memref<64x128xf32, #tpu.memory_space<vmem>>) attributes {dimension_semantics = [#tpu.dimension_semantics<parallel>], iteration_bounds = array<i64: 1>, scalar_prefetch = 0 : i64, scratch_operands = 0 : i64, tpu.core_type = #tpu.core_type<tc>, window_params = [{transform_indices = @transform_0, window_bounds = array<i64: 64, 16>}, {pipeline_mode = #tpu.pipeline_mode<synchronous>, transform_indices = @transform_1, window_bounds = array<i64: 16, 128>}, {pipeline_mode = #tpu.pipeline_mode<synchronous>, transform_indices = @transform_2, window_bounds = array<i64: 1, 128>}, {pipeline_mode = #tpu.pipeline_mode<synchronous>, transform_indices = @transform_3, window_bounds = array<i64: 128, 128>}, {pipeline_mode = #tpu.pipeline_mode<synchronous>, transform_indices = @transform_4, window_bounds = array<i64: 1, 128>}, {pipeline_mode = #tpu.pipeline_mode<synchronous>, transform_indices = @transform_5, window_bounds = array<i64: 128, 128>}, {pipeline_mode = #tpu.pipeline_mode<synchronous>, transform_indices = @transform_6, window_bounds = array<i64: 1, 128>}, {pipeline_mode = #tpu.pipeline_mode<synchronous>, transform_indices = @transform_7, window_bounds = array<i64: 128, 128>}, {pipeline_mode = #tpu.pipeline_mode<synchronous>, transform_indices = @transform_8, window_bounds = array<i64: 1, 128>}, {transform_indices = @transform_9, window_bounds = array<i64: 64, 128>}]} {
    %c0 = arith.constant 0 : index
    %c0_0 = arith.constant 0 : index
    %0 = vector.load %arg1[%c0, %c0_0] : memref<64x16xf32, #tpu.memory_space<vmem>>, vector<64x16xf32>
    %1 = arith.truncf %0 : vector<64x16xf32> to vector<64x16xbf16>
    %c0_1 = arith.constant 0 : index
    %c0_2 = arith.constant 0 : index
    %2 = vector.load %arg2[%c0_1, %c0_2] : memref<16x128xbf16, #tpu.memory_space<vmem>>, vector<16x128xbf16>
    %cst = arith.constant dense<0.000000e+00> : vector<64x128xf32>
    %3 = tpu.matmul %1, %2, %cst {dimension_numbers = #tpu.dot_dimension_numbers<[1], [0], [0], [1], [0, 0, 1, 1], [], []>} : vector<64x16xbf16>, vector<16x128xbf16>, vector<64x128xf32> -> vector<64x128xf32>
    %c0_3 = arith.constant 0 : index
    %c0_4 = arith.constant 0 : index
    %4 = vector.load %arg3[%c0_3, %c0_4] : memref<1x128xf32, #tpu.memory_space<vmem>>, vector<1x128xf32>
    %5 = vector.broadcast %4 : vector<1x128xf32> to vector<64x128xf32>
    %6 = arith.addf %3, %5 : vector<64x128xf32>
    %cst_5 = arith.constant 0.000000e+00 : f32
    %7 = vector.broadcast %cst_5 : f32 to vector<64x128xf32>
    %8 = arith.maximumf %6, %7 : vector<64x128xf32>
    %9 = arith.truncf %8 : vector<64x128xf32> to vector<64x128xbf16>
    %c0_6 = arith.constant 0 : index
    %c0_7 = arith.constant 0 : index
    %10 = vector.load %arg4[%c0_6, %c0_7] : memref<128x128xbf16, #tpu.memory_space<vmem>>, vector<128x128xbf16>
    %cst_8 = arith.constant dense<0.000000e+00> : vector<64x128xf32>
    %11 = tpu.matmul %9, %10, %cst_8 {dimension_numbers = #tpu.dot_dimension_numbers<[1], [0], [0], [1], [0, 0, 1, 1], [], []>} : vector<64x128xbf16>, vector<128x128xbf16>, vector<64x128xf32> -> vector<64x128xf32>
    %c0_9 = arith.constant 0 : index
    %c0_10 = arith.constant 0 : index
    %12 = vector.load %arg5[%c0_9, %c0_10] : memref<1x128xf32, #tpu.memory_space<vmem>>, vector<1x128xf32>
    %13 = vector.broadcast %12 : vector<1x128xf32> to vector<64x128xf32>
    %14 = arith.addf %11, %13 : vector<64x128xf32>
    %cst_11 = arith.constant 0.000000e+00 : f32
    %15 = vector.broadcast %cst_11 : f32 to vector<64x128xf32>
    %16 = arith.maximumf %14, %15 : vector<64x128xf32>
    %17 = arith.truncf %16 : vector<64x128xf32> to vector<64x128xbf16>
    %c0_12 = arith.constant 0 : index
    %c0_13 = arith.constant 0 : index
    %18 = vector.load %arg6[%c0_12, %c0_13] : memref<128x128xbf16, #tpu.memory_space<vmem>>, vector<128x128xbf16>
    %cst_14 = arith.constant dense<0.000000e+00> : vector<64x128xf32>
    %19 = tpu.matmul %17, %18, %cst_14 {dimension_numbers = #tpu.dot_dimension_numbers<[1], [0], [0], [1], [0, 0, 1, 1], [], []>} : vector<64x128xbf16>, vector<128x128xbf16>, vector<64x128xf32> -> vector<64x128xf32>
    %c0_15 = arith.constant 0 : index
    %c0_16 = arith.constant 0 : index
    %20 = vector.load %arg7[%c0_15, %c0_16] : memref<1x128xf32, #tpu.memory_space<vmem>>, vector<1x128xf32>
    %21 = vector.broadcast %20 : vector<1x128xf32> to vector<64x128xf32>
    %22 = arith.addf %19, %21 : vector<64x128xf32>
    %cst_17 = arith.constant 0.000000e+00 : f32
    %23 = vector.broadcast %cst_17 : f32 to vector<64x128xf32>
    %24 = arith.maximumf %22, %23 : vector<64x128xf32>
    %25 = arith.truncf %24 : vector<64x128xf32> to vector<64x128xbf16>
    %c0_18 = arith.constant 0 : index
    %c0_19 = arith.constant 0 : index
    %26 = vector.load %arg8[%c0_18, %c0_19] : memref<128x128xbf16, #tpu.memory_space<vmem>>, vector<128x128xbf16>
    %cst_20 = arith.constant dense<0.000000e+00> : vector<64x128xf32>
    %27 = tpu.matmul %25, %26, %cst_20 {dimension_numbers = #tpu.dot_dimension_numbers<[1], [0], [0], [1], [0, 0, 1, 1], [], []>} : vector<64x128xbf16>, vector<128x128xbf16>, vector<64x128xf32> -> vector<64x128xf32>
    %c0_21 = arith.constant 0 : index
    %c0_22 = arith.constant 0 : index
    %28 = vector.load %arg9[%c0_21, %c0_22] : memref<1x128xf32, #tpu.memory_space<vmem>>, vector<1x128xf32>
    %29 = vector.broadcast %28 : vector<1x128xf32> to vector<64x128xf32>
    %30 = arith.addf %27, %29 : vector<64x128xf32>
    %31 = tpu.iota {dimensions = array<i32: 1>} : vector<64x128xi32>
    %c4_i32 = arith.constant 4 : i32
    %32 = vector.broadcast %c4_i32 : i32 to vector<64x128xi32>
    %33 = arith.cmpi sge, %31, %32 : vector<64x128xi32>
    %c8_i32 = arith.constant 8 : i32
    %34 = vector.broadcast %c8_i32 : i32 to vector<64x128xi32>
    %35 = arith.cmpi slt, %31, %34 : vector<64x128xi32>
    %36 = arith.andi %33, %35 : vector<64x128xi1>
    %cst_23 = arith.constant -2.000000e+01 : f32
    %cst_24 = arith.constant 2.000000e+00 : f32
    %37 = vector.broadcast %cst_23 : f32 to vector<64x128xf32>
    %38 = arith.maximumf %37, %30 : vector<64x128xf32>
    %39 = vector.broadcast %cst_24 : f32 to vector<64x128xf32>
    %40 = arith.minimumf %39, %38 : vector<64x128xf32>
    %41 = math.exp %40 : vector<64x128xf32>
    %42 = arith.select %36, %41, %30 : vector<64x128xi1>, vector<64x128xf32>
    %c0_25 = arith.constant 0 : index
    %c0_26 = arith.constant 0 : index
    %43 = vector.load %arg10[%c0_25, %c0_26] : memref<64x128xf32, #tpu.memory_space<vmem>>, vector<64x128xf32>
    tpu.vector_store %arg10[%c0_25, %c0_26], %42 {strides = array<i32>} : memref<64x128xf32, #tpu.memory_space<vmem>>, vector<64x128xf32>,
    return
  }
  func.func @transform_0(%arg0: i32) -> (i32, i32) {
    %c0_i32 = arith.constant 0 : i32
    %c0_i32_0 = arith.constant 0 : i32
    return %arg0, %c0_i32 : i32, i32
  }
  func.func @transform_1(%arg0: i32) -> (i32, i32) {
    %c0_i32 = arith.constant 0 : i32
    %c0_i32_0 = arith.constant 0 : i32
    %c0_i32_1 = arith.constant 0 : i32
    return %c0_i32, %c0_i32_0 : i32, i32
  }
  func.func @transform_2(%arg0: i32) -> (i32, i32) {
    %c0_i32 = arith.constant 0 : i32
    %c0_i32_0 = arith.constant 0 : i32
    %c0_i32_1 = arith.constant 0 : i32
    return %c0_i32, %c0_i32_0 : i32, i32
  }
  func.func @transform_3(%arg0: i32) -> (i32, i32) {
    %c0_i32 = arith.constant 0 : i32
    %c0_i32_0 = arith.constant 0 : i32
    %c0_i32_1 = arith.constant 0 : i32
    return %c0_i32, %c0_i32_0 : i32, i32
  }
  func.func @transform_4(%arg0: i32) -> (i32, i32) {
    %c0_i32 = arith.constant 0 : i32
    %c0_i32_0 = arith.constant 0 : i32
    %c0_i32_1 = arith.constant 0 : i32
    return %c0_i32, %c0_i32_0 : i32, i32
  }
  func.func @transform_5(%arg0: i32) -> (i32, i32) {
    %c0_i32 = arith.constant 0 : i32
    %c0_i32_0 = arith.constant 0 : i32
    %c0_i32_1 = arith.constant 0 : i32
    return %c0_i32, %c0_i32_0 : i32, i32
  }
  func.func @transform_6(%arg0: i32) -> (i32, i32) {
    %c0_i32 = arith.constant 0 : i32
    %c0_i32_0 = arith.constant 0 : i32
    %c0_i32_1 = arith.constant 0 : i32
    return %c0_i32, %c0_i32_0 : i32, i32
  }
  func.func @transform_7(%arg0: i32) -> (i32, i32) {
    %c0_i32 = arith.constant 0 : i32
    %c0_i32_0 = arith.constant 0 : i32
    %c0_i32_1 = arith.constant 0 : i32
    return %c0_i32, %c0_i32_0 : i32, i32
  }
  func.func @transform_8(%arg0: i32) -> (i32, i32) {
    %c0_i32 = arith.constant 0 : i32
    %c0_i32_0 = arith.constant 0 : i32
    %c0_i32_1 = arith.constant 0 : i32
    return %c0_i32, %c0_i32_0 : i32, i32
  }
  func.func @transform_9(%arg0: i32) -> (i32, i32) {
    %c0_i32 = arith.constant 0 : i32
    %c0_i32_0 = arith.constant 0 : i32
    return %arg0, %c0_i32 : i32, i32
  }
}

</mosaic_0001>

<bundles_post_ra>
// kernel: tpu_custom_call.1
= control target key start
LH: loop header
LB: loop body
LE: loop exit
PB: predicated region body
PF: predicated region fallthrough
CT: control target
= control target key end

     0   :  { %14 = vsyncpa [#allocation3], 0  ;;  %s1154_s0 = inlined_call_operand.vmem [shape: f32[64,16], index: 0, kind: input, shape index: {}]   ;;  %s1155_s1 = inlined_call_operand.vmem [shape: bf16[16,128], index: 1, kind: input, shape index: {}]   ;;  %s1156_s2 = inlined_call_operand.vmem [shape: f32[1,128], index: 2, kind: input, shape index: {}]   ;;  %s1157_s3 = inlined_call_operand.vmem [shape: bf16[128,128], index: 3, kind: input, shape index: {}]   ;;  %s1158_s4 = inlined_call_operand.vmem [shape: f32[1,128], index: 4, kind: input, shape index: {}]   ;;  %s1159_s5 = inlined_call_operand.hbm [shape: bf16[128,128], index: 5, kind: input, shape index: {}]   ;;  %s1160_s6 = inlined_call_operand.vmem [shape: f32[1,128], index: 6, kind: input, shape index: {}]   ;;  %s1161_s7 = inlined_call_operand.hbm [shape: bf16[128,128], index: 7, kind: input, shape index: {}]   ;;  %s1162_s8 = inlined_call_operand.vmem [shape: f32[1,128], index: 8, kind: input, shape index: {}]   ;;  %s1163_s9 = inlined_call_operand.hbm [shape: f32[64,128], index: 9, kind: output, shape index: {}]  }
   0x1   :  { %15 = vsyncpa [#allocation6], 0 }
   0x2   :  { %16 = vsyncpa [#allocation4], 0  ;;  %s974_s30 = smov [#allocation2]   ;;  %s902_s13 = scalar_lea.hbm %s1159_s5, 1024 }
   0x3   :  { %s32_s10 = sshll.u32 %s974_s30, 4  ;;  %p903_p0 = scmp.ne.s32.totalorder %s1159_s5, %s902_s13  ;;  %s33_s10 = int_to_ptr.vmem [resolvable:$true] %s32_s10 }
   0x4   :  { %p906_p1 = scmp.lt.u32.totalorder %s902_s13, %s1159_s5 }
   0x6   :  { %p908_p2 = pnand %p906_p1, %p903_p0 }
   0x8   :  { %911 = shalt.err (!%p908_p2)
}
   0x9   :  { %s912_s18 = scalar_lea.vmem %s33_s10, 1024  ;;  %p917_p4 = scmp.lt.s32.totalorder %s33_s10, %s33_s10 }
   0xa   :  { %p913_p3 = scmp.ne.s32.totalorder %s33_s10, %s912_s18  ;;  %p918_p5 = scmp.lt.s32.totalorder %s912_s18, %s912_s18 }
   0xc   :  { %p919_p6 = por %p918_p5, %p917_p4 }
   0xe   :  { %p920_p7 = pnand %p919_p6, %p913_p3 }
  0x10   :  { %923 = shalt.err (!%p920_p7)
}
  0x11   :  { %s975_s19 = smov 64   ;;  %s976_s20 = smov 4  }
  0x12   :  { %38 = dma.hbm_to_vmem [thread:$0]  %s1159_s5, 1024, %s33_s10, [#allocation3], %s975_s19, %s975_s19, %s976_s20  }
  0x13   :  { %s977_s23 = smov [#allocation5]   ;;  %s924_s27 = scalar_lea.hbm %s1161_s7, 1024 }
  0x14   :  { %s46_s24 = sshll.u32 %s977_s23, 4  ;;  %p925_p8 = scmp.ne.s32.totalorder %s1161_s7, %s924_s27  ;;  %s47_s24 = int_to_ptr.vmem [resolvable:$true] %s46_s24 }
  0x15   :  { %p928_p9 = scmp.lt.u32.totalorder %s924_s27, %s1161_s7 }
  0x17   :  { %p930_p10 = pnand %p928_p9, %p925_p8 }
  0x19   :  { %933 = shalt.err (!%p930_p10)
}
  0x1a   :  { %s934_s12 = scalar_lea.vmem %s47_s24, 1024  ;;  %p939_p12 = scmp.lt.s32.totalorder %s47_s24, %s47_s24 }
  0x1b   :  { %p935_p11 = scmp.ne.s32.totalorder %s47_s24, %s934_s12  ;;  %p940_p13 = scmp.lt.s32.totalorder %s934_s12, %s934_s12 }
  0x1d   :  { %p941_p0 = por %p940_p13, %p939_p12 }
  0x1f   :  { %p942_p1 = pnand %p941_p0, %p935_p11 }
  0x21   :  { %945 = shalt.err (!%p942_p1)
}
  0x22   :  { %52 = dma.hbm_to_vmem [thread:$0]  %s1161_s7, 1024, %s47_s24, [#allocation6], %s975_s19, %s975_s19, %s976_s20  }
  0x23   :  { %968 = dma.done.wait [#allocation3], 1024  }
  0x24   :  { %969 = vsyncadd [#allocation3], 4294966272 }
  0x25   :  { %970 = dma.done.wait [#allocation6], 1024  }
  0x26   :  { %971 = vsyncadd [#allocation6], 4294966272  ;;  %v861_v0 = vld [vmem:[%s1155_s1] sm:$0xff]   ;;  %v63_v2 = vld [vmem:[%s1154_s0 + $0x8] sm:$0xff]  ;;  %vm89_vm0 = vcmask 130048  }
  0x27   :  { %v62_v1 = vld [vmem:[%s1154_s0] sm:$0xff]  ;;  %v64_v3 = vld [vmem:[%s1154_s0 + $0x10] sm:$0xff]  ;;  %756 = vmatprep.subr.bf16.mxu0 %v861_v0  ;;  %v65_v5 = vld [vmem:[%s1154_s0 + $0x18] sm:$0xff] }
  0x28   :  { %v70_v4 = vpack.c.bf16 %v63_v2, %v62_v1  ;;  %v66_v6 = vld [vmem:[%s1154_s0 + $0x20] sm:$0xff]  ;;  %v67_v7 = vld [vmem:[%s1154_s0 + $0x28] sm:$0xff]  ;;  %757 = vmatpush3.bf16.msra.mxu0 %v861_v0  ;;  %v71_v8 = vpack.c.bf16 %v65_v5, %v64_v3  ;;  %v68_v12 = vld [vmem:[%s1154_s0 + $0x30] sm:$0xff] }
  0x29   :  { %v72_v9 = vpack.c.bf16 %v67_v7, %v66_v6  ;;  %v862_v10 = vld [vmem:[%s1157_s3] sm:$0xff]   ;;  %v863_v11 = vld [vmem:[%s1157_s3 + $0x8] sm:$0xff]   ;;  %v69_v13 = vld [vmem:[%s1154_s0 + $0x38] sm:$0xff] }
  0x2a   :  { %758 = vmatprep.mubr.msk.bf16.mxu0 %vm89_vm0, %v70_v4  ;;  %766 = vmatprep.subr.bf16.mxu1 %v862_v10  ;;  %v864_v14 = vld [vmem:[%s1157_s3 + $0x10] sm:$0xff]   ;;  %v73_v15 = vpack.c.bf16 %v69_v13, %v68_v12  ;;  %v865_v16 = vld [vmem:[%s1157_s3 + $0x18] sm:$0xff]   ;;  %v866_v17 = vld [vmem:[%s1157_s3 + $0x20] sm:$0xff]  }
  0x2b   :  { %759 = vmatmul.mubr.msk.bf16.vlgmr.msra.gmra.mrb[0].mxu0 %vm89_vm0, %v71_v8  ;;  %767 = vmatpush3.bf16.msra.mxu1 %v862_v10  ;;  %v867_v18 = vld [vmem:[%s1157_s3 + $0x28] sm:$0xff]   ;;  %v868_v19 = vld [vmem:[%s1157_s3 + $0x30] sm:$0xff]   ;;  %v869_v20 = vld [vmem:[%s1157_s3 + $0x38] sm:$0xff]  }
  0x2c   :  { %762 = vmatprep.mubr.msk.bf16.mxu0 %vm89_vm0, %v72_v9  ;;  %768 = vmatprep.subr.bf16.mxu1 %v863_v11  ;;  %v870_v21 = vld [vmem:[#allocation2] sm:$0xff]   ;;  %v871_v22 = vld [vmem:[#allocation2 + $0x8] sm:$0xff]   ;;  %v872_v23 = vld [vmem:[#allocation2 + $0x10] sm:$0xff]  }
  0x2d   :  { %790 = vmatprep.subr.bf16.mxu0 %v870_v21  ;;  %v873_v24 = vld [vmem:[#allocation2 + $0x18] sm:$0xff]   ;;  %v874_v25 = vld [vmem:[#allocation2 + $0x20] sm:$0xff]   ;;  %v875_v26 = vld [vmem:[#allocation2 + $0x28] sm:$0xff]  }
  0x2e   :  { %791 = vmatpush3.bf16.msra.mxu0 %v870_v21  ;;  %v682_v27 = vld [vmem:[%s1156_s2] ss:$0 sm:$0xff]  ;;  %v876_v56 = vld [vmem:[#allocation2 + $0x30] sm:$0xff]   ;;  %v877_v57 = vld [vmem:[#allocation2 + $0x38] sm:$0xff]  }
  0x2f   :  { %769 = vmatpush3.bf16.msra.mxu1 %v863_v11  ;;  %792 = vmatprep.subr.bf16.mxu0 %v871_v22  ;;  %v878_v58 = vld [vmem:[#allocation5] sm:$0xff]   ;;  %v879_v59 = vld [vmem:[#allocation5 + $0x8] sm:$0xff]   ;;  %v880_v60 = vld [vmem:[#allocation5 + $0x10] sm:$0xff]  }
  0x30   :  { %770 = vmatprep.subr.bf16.mxu1 %v864_v14  ;;  %v881_v61 = vld [vmem:[#allocation5 + $0x18] sm:$0xff]   ;;  %v882_v62 = vld [vmem:[#allocation5 + $0x20] sm:$0xff]   ;;  %v883_v63 = vld [vmem:[#allocation5 + $0x28] sm:$0xff]  }
  0x31   :  { %v688_v0 = vld [vmem:[%s1158_s4] ss:$0 sm:$0xff] }
  0x32   :  { %793 = vmatpush3.bf16.msra.mxu0 %v871_v22 }
  0x33   :  { %763 = vmatmul.mubr.msk.bf16.gmra.mrb[4].mxu0 %vm89_vm0, %v73_v15  ;;  %771 = vmatpush3.bf16.msra.mxu1 %v864_v14 }
  0x34   :  { %772 = vmatprep.subr.bf16.mxu1 %v865_v16  ;;  %794 = vmatprep.subr.bf16.mxu0 %v872_v23 }
  0x36   :  { %795 = vmatpush3.bf16.msra.mxu0 %v872_v23 }
  0x37   :  { %773 = vmatpush3.bf16.msra.mxu1 %v865_v16  ;;  %796 = vmatprep.subr.bf16.mxu0 %v873_v24 }
  0x38   :  { %774 = vmatprep.subr.bf16.mxu1 %v866_v17 }
  0x3a   :  { %797 = vmatpush3.bf16.msra.mxu0 %v873_v24 }
  0x3b   :  { %775 = vmatpush3.bf16.msra.mxu1 %v866_v17  ;;  %798 = vmatprep.subr.bf16.mxu0 %v874_v25 }
  0x3c   :  { %776 = vmatprep.subr.bf16.mxu1 %v867_v18 }
  0x3e   :  { %799 = vmatpush3.bf16.msra.mxu0 %v874_v25 }
  0x3f   :  { %777 = vmatpush3.bf16.msra.mxu1 %v867_v18  ;;  %800 = vmatprep.subr.bf16.mxu0 %v875_v26 }
  0x40   :  { %778 = vmatprep.subr.bf16.mxu1 %v868_v19 }
  0x42   :  { %801 = vmatpush3.bf16.msra.mxu0 %v875_v26 }
  0x43   :  { %779 = vmatpush3.bf16.msra.mxu1 %v868_v19  ;;  %802 = vmatprep.subr.bf16.mxu0 %v876_v56 }
  0x44   :  { %780 = vmatprep.subr.bf16.mxu1 %v869_v20 }
  0x46   :  { %803 = vmatpush3.bf16.msra.mxu0 %v876_v56 }
  0x47   :  { %781 = vmatpush3.bf16.msra.mxu1 %v869_v20  ;;  %804 = vmatprep.subr.bf16.mxu0 %v877_v57 }
  0x48   :  { %838 = vmatprep.subr.bf16.mxu1 %v878_v58 }
  0x4a   :  { %805 = vmatpush3.bf16.msra.mxu0 %v877_v57 }
  0x4b   :  { %814 = vmatprep.subr.bf16.mxu0 %v878_v58 }
  0xfe   :  { %v760_v28 = vpop.f32.mrb[0].mxu0 }
  0xff   :  { %v145_v29 = vadd.f32 %v760_v28, %v682_v27  ;;  %v136_v30 = vpop.f32.mrb[1].mxu0 }
 0x100   :  { %v137_v31 = vadd.f32 %v682_v27, %v136_v30  ;;  %v761_v32 = vpop.f32.mrb[2].mxu0  ;;  %v885_v30 = vld [vmem:[#allocation5 + $0x38] sm:$0xff]  }
 0x101   :  { %v148_v33 = vadd.f32 %v761_v32, %v682_v27  ;;  %v139_v34 = vpop.f32.mrb[3].mxu0  ;;  %v169_v36 = vmax.f32 %v145_v29, 0.0  ;;  %v884_v29 = vld [vmem:[#allocation5 + $0x30] sm:$0xff]  }
 0x102   :  { %v140_v35 = vadd.f32 %v682_v27, %v139_v34  ;;  %v167_v38 = vmax.f32 %v137_v31, 0.0  ;;  %v697_v31 = vld [vmem:[%s1160_s6] ss:$0 sm:$0xff] }
 0x103   :  { %v170_v37 = vmax.f32 %v148_v33, 0.0 }
 0x104   :  { %v168_v39 = vmax.f32 %v140_v35, 0.0 }
 0x105   :  { %v176_v40 = vpack.c.bf16 %v170_v37, %v169_v36 }
 0x106   :  { %v764_v41 = vpop.f32.mrb[4].mxu0  ;;  %v175_v42 = vpack.c.bf16 %v168_v39, %v167_v38 }
 0x107   :  { %v161_v43 = vadd.f32 %v764_v41, %v682_v27  ;;  %v152_v44 = vpop.f32.mrb[5].mxu0 }
 0x108   :  { %v153_v45 = vadd.f32 %v682_v27, %v152_v44  ;;  %v765_v46 = vpop.f32.mrb[6].mxu0  ;;  %782 = vmatprep.mubr.bf16.mxu1 %v175_v42 }
 0x109   :  { %v164_v47 = vadd.f32 %v765_v46, %v682_v27  ;;  %v155_v48 = vpop.f32.mrb[7].mxu0  ;;  %783 = vmatmul.mubr.bf16.vlgmr.msra.gmra.mrb[0].mxu1 %v176_v40  ;;  %v173_v50 = vmax.f32 %v161_v43, 0.0 }
 0x10a   :  { %v156_v49 = vadd.f32 %v682_v27, %v155_v48  ;;  %v171_v52 = vmax.f32 %v153_v45, 0.0  ;;  %846 = vmatpush3.bf16.msra.mxu1 %v878_v58 }
 0x10b   :  { %v174_v51 = vmax.f32 %v164_v47, 0.0  ;;  %839 = vmatprep.subr.bf16.mxu1 %v879_v59 }
 0x10c   :  { %v172_v53 = vmax.f32 %v156_v49, 0.0 }
 0x10d   :  { %v178_v54 = vpack.c.bf16 %v174_v51, %v173_v50 }
 0x10e   :  { %v177_v55 = vpack.c.bf16 %v172_v53, %v171_v52  ;;  %847 = vmatpush3.bf16.msra.mxu1 %v879_v59 }
 0x10f   :  { %840 = vmatprep.subr.bf16.mxu1 %v880_v60 }
 0x110   :  { %786 = vmatprep.mubr.bf16.mxu1 %v177_v55 }
 0x111   :  { %787 = vmatmul.mubr.bf16.gmra.mrb[4].mxu1 %v178_v54 }
 0x112   :  { %848 = vmatpush3.bf16.msra.mxu1 %v880_v60 }
 0x113   :  { %841 = vmatprep.subr.bf16.mxu1 %v881_v61 }
 0x116   :  { %849 = vmatpush3.bf16.msra.mxu1 %v881_v61 }
 0x117   :  { %842 = vmatprep.subr.bf16.mxu1 %v882_v62 }
 0x11a   :  { %850 = vmatpush3.bf16.msra.mxu1 %v882_v62 }
 0x11b   :  { %843 = vmatprep.subr.bf16.mxu1 %v883_v63 }
 0x11e   :  { %851 = vmatpush3.bf16.msra.mxu1 %v883_v63 }
 0x11f   :  { %844 = vmatprep.subr.bf16.mxu1 %v884_v29 }
 0x122   :  { %852 = vmatpush3.bf16.msra.mxu1 %v884_v29 }
 0x123   :  { %845 = vmatprep.subr.bf16.mxu1 %v885_v30 }
 0x126   :  { %853 = vmatpush3.bf16.msra.mxu1 %v885_v30 }
 0x1dc   :  { %v784_v1 = vpop.f32.mrb[0].mxu1 }
 0x1dd   :  { %v293_v2 = vadd.f32 %v784_v1, %v688_v0  ;;  %v284_v3 = vpop.f32.mrb[1].mxu1 }
 0x1de   :  { %v285_v4 = vadd.f32 %v688_v0, %v284_v3  ;;  %v785_v5 = vpop.f32.mrb[2].mxu1 }
 0x1df   :  { %v296_v6 = vadd.f32 %v785_v5, %v688_v0  ;;  %v287_v7 = vpop.f32.mrb[3].mxu1  ;;  %v317_v9 = vmax.f32 %v293_v2, 0.0 }
 0x1e0   :  { %v288_v8 = vadd.f32 %v688_v0, %v287_v7  ;;  %v315_v11 = vmax.f32 %v285_v4, 0.0 }
 0x1e1   :  { %v318_v10 = vmax.f32 %v296_v6, 0.0 }
 0x1e2   :  { %v316_v12 = vmax.f32 %v288_v8, 0.0 }
 0x1e3   :  { %v324_v13 = vpack.c.bf16 %v318_v10, %v317_v9  ;;  %v611_v9 = vlaneseq }
 0x1e4   :  { %v323_v14 = vpack.c.bf16 %v316_v12, %v315_v11  ;;  %v788_v15 = vpop.f32.mrb[4].mxu1 }
 0x1e5   :  { %v309_v16 = vadd.f32 %v788_v15, %v688_v0  ;;  %v300_v17 = vpop.f32.mrb[5].mxu1 }
 0x1e6   :  { %v301_v18 = vadd.f32 %v688_v0, %v300_v17  ;;  %v789_v19 = vpop.f32.mrb[6].mxu1  ;;  %806 = vmatprep.mubr.bf16.mxu0 %v323_v14 }
 0x1e7   :  { %v312_v20 = vadd.f32 %v789_v19, %v688_v0  ;;  %v303_v21 = vpop.f32.mrb[7].mxu1  ;;  %807 = vmatmul.mubr.bf16.vlgmr.msra.gmra.mrb[8].mxu0 %v324_v13  ;;  %v321_v23 = vmax.f32 %v309_v16, 0.0 }
 0x1e8   :  { %v304_v22 = vadd.f32 %v688_v0, %v303_v21  ;;  %815 = vmatpush3.bf16.msra.mxu0 %v878_v58  ;;  %v319_v25 = vmax.f32 %v301_v18, 0.0 }
 0x1e9   :  { %v322_v24 = vmax.f32 %v312_v20, 0.0  ;;  %816 = vmatprep.subr.bf16.mxu0 %v879_v59  ;;  %v612_v20 = vand.u32 127, %v611_v9 }
 0x1ea   :  { %v320_v26 = vmax.f32 %v304_v22, 0.0 }
 0x1eb   :  { %v326_v27 = vpack.c.bf16 %v322_v24, %v321_v23  ;;  %vm613_vm1 = vcmp.ge.s32.totalorder %v612_v20, 4  ;;  %vm614_vm2 = vcmp.lt.s32.totalorder %v612_v20, 8 }
 0x1ec   :  { %v325_v28 = vpack.c.bf16 %v320_v26, %v319_v25  ;;  %817 = vmatpush3.bf16.msra.mxu0 %v879_v59  ;;  %vm1122_vm3 = vmand %vm613_vm1, %vm614_vm2 }
 0x1ed   :  { %818 = vmatprep.subr.bf16.mxu0 %v880_v60 }
 0x1ee   :  { %810 = vmatprep.mubr.bf16.mxu0 %v325_v28 }
 0x1ef   :  { %811 = vmatmul.mubr.bf16.gmra.mrb[12].mxu0 %v326_v27 }
 0x1f0   :  { %819 = vmatpush3.bf16.msra.mxu0 %v880_v60  ;;  %v706_v60 = vld [vmem:[%s1162_s8] ss:$0 sm:$0xff]  ;;  %s978_s8 = smov [#allocation7]  }
 0x1f1   :  { %820 = vmatprep.subr.bf16.mxu0 %v881_v61  ;;  %s669_s24 = sshll.u32 %s978_s8, 4  ;;  %s670_s24 = int_to_ptr.vmem [resolvable:$true] %s669_s24 }
 0x1f2   :  { %s946_s25 = scalar_lea.vmem %s670_s24, 1024  ;;  %p951_p3 = scmp.lt.s32.totalorder %s670_s24, %s670_s24 }
 0x1f3   :  { %p947_p2 = scmp.ne.s32.totalorder %s670_s24, %s946_s25  ;;  %p952_p4 = scmp.lt.s32.totalorder %s946_s25, %s946_s25 }
 0x1f4   :  { %821 = vmatpush3.bf16.msra.mxu0 %v881_v61 }
 0x1f5   :  { %822 = vmatprep.subr.bf16.mxu0 %v882_v62  ;;  %p953_p5 = por %p952_p4, %p951_p3 }
 0x1f7   :  { %p954_p6 = pnand %p953_p5, %p947_p2 }
 0x1f8   :  { %823 = vmatpush3.bf16.msra.mxu0 %v882_v62 }
 0x1f9   :  { %824 = vmatprep.subr.bf16.mxu0 %v883_v63 }
 0x1fc   :  { %825 = vmatpush3.bf16.msra.mxu0 %v883_v63 }
 0x1fd   :  { %826 = vmatprep.subr.bf16.mxu0 %v884_v29 }
 0x200   :  { %827 = vmatpush3.bf16.msra.mxu0 %v884_v29 }
 0x201   :  { %828 = vmatprep.subr.bf16.mxu0 %v885_v30 }
 0x204   :  { %829 = vmatpush3.bf16.msra.mxu0 %v885_v30 }
 0x2ba   :  { %v808_v32 = vpop.f32.mrb[8].mxu0 }
 0x2bb   :  { %v441_v33 = vadd.f32 %v808_v32, %v697_v31  ;;  %v432_v34 = vpop.f32.mrb[9].mxu0 }
 0x2bc   :  { %v433_v35 = vadd.f32 %v697_v31, %v432_v34  ;;  %v809_v36 = vpop.f32.mrb[10].mxu0 }
 0x2bd   :  { %v444_v37 = vadd.f32 %v809_v36, %v697_v31  ;;  %v435_v38 = vpop.f32.mrb[11].mxu0  ;;  %v465_v40 = vmax.f32 %v441_v33, 0.0 }
 0x2be   :  { %v436_v39 = vadd.f32 %v697_v31, %v435_v38  ;;  %v463_v42 = vmax.f32 %v433_v35, 0.0 }
 0x2bf   :  { %v466_v41 = vmax.f32 %v444_v37, 0.0 }
 0x2c0   :  { %v464_v43 = vmax.f32 %v436_v39, 0.0 }
 0x2c1   :  { %v472_v44 = vpack.c.bf16 %v466_v41, %v465_v40 }
 0x2c2   :  { %v471_v45 = vpack.c.bf16 %v464_v43, %v463_v42  ;;  %v812_v46 = vpop.f32.mrb[12].mxu0 }
 0x2c3   :  { %v457_v47 = vadd.f32 %v812_v46, %v697_v31  ;;  %v448_v48 = vpop.f32.mrb[13].mxu0 }
 0x2c4   :  { %v449_v49 = vadd.f32 %v697_v31, %v448_v48  ;;  %v813_v50 = vpop.f32.mrb[14].mxu0  ;;  %830 = vmatprep.mubr.bf16.mxu0 %v471_v45 }
 0x2c5   :  { %v460_v51 = vadd.f32 %v813_v50, %v697_v31  ;;  %v451_v52 = vpop.f32.mrb[15].mxu0  ;;  %831 = vmatmul.mubr.bf16.vlgmr.msra.gmra.mrb[16].mxu0 %v472_v44  ;;  %v469_v54 = vmax.f32 %v457_v47, 0.0 }
 0x2c6   :  { %v452_v53 = vadd.f32 %v697_v31, %v451_v52  ;;  %v467_v56 = vmax.f32 %v449_v49, 0.0 }
 0x2c7   :  { %v470_v55 = vmax.f32 %v460_v51, 0.0 }
 0x2c8   :  { %v468_v57 = vmax.f32 %v452_v53, 0.0 }
 0x2c9   :  { %v474_v58 = vpack.c.bf16 %v470_v55, %v469_v54 }
 0x2ca   :  { %v473_v59 = vpack.c.bf16 %v468_v57, %v467_v56 }
 0x2cc   :  { %834 = vmatprep.mubr.bf16.mxu1 %v473_v59 }
 0x2cd   :  { %835 = vmatmul.mubr.bf16.vlgmr.msra.gmra.mrb[8].mxu1 %v474_v58 }
 0x398   :  { %v832_v61 = vpop.f32.mrb[16].mxu0 }
 0x399   :  { %v589_v62 = vadd.f32 %v832_v61, %v706_v60  ;;  %v580_v63 = vpop.f32.mrb[17].mxu0 }
 0x39a   :  { %v581_v0 = vadd.f32 %v706_v60, %v580_v63  ;;  %v833_v1 = vpop.f32.mrb[18].mxu0 }
 0x39b   :  { %v618_v2 = vmax.f32 %v589_v62, -20.0  ;;  %v592_v3 = vadd.f32 %v833_v1, %v706_v60  ;;  %v583_v4 = vpop.f32.mrb[19].mxu0 }
 0x39c   :  { %v616_v5 = vmax.f32 %v581_v0, -20.0  ;;  %v584_v6 = vadd.f32 %v706_v60, %v583_v4 }
 0x39d   :  { %v626_v7 = vmin.f32 %v618_v2, 2.0  ;;  %v619_v8 = vmax.f32 %v592_v3, -20.0 }
 0x39e   :  { %v624_v10 = vmin.f32 %v616_v5, 2.0  ;;  %v617_v11 = vmax.f32 %v584_v6, -20.0 }
 0x39f   :  { %v636_v12 = vmul.f32 1.442695, %v626_v7  ;;  %v627_v13 = vmin.f32 %v619_v8, 2.0 }
 0x3a0   :  { %v632_v14 = vmul.f32 1.442695, %v624_v10  ;;  %v625_v15 = vmin.f32 %v617_v11, 2.0  ;;  %v836_v16 = vpop.f32.mrb[8].mxu1 }
 0x3a1   :  { %886 = vpow2.f32 %v636_v12  ;;  %v638_v17 = vmul.f32 1.442695, %v627_v13  ;;  %v605_v18 = vadd.f32 %v836_v16, %v706_v60  ;;  %v596_v19 = vpop.f32.mrb[9].mxu1 }
 0x3a2   :  { %888 = vpow2.f32 %v632_v14  ;;  %v634_v21 = vmul.f32 1.442695, %v625_v15  ;;  %v597_v22 = vadd.f32 %v706_v60, %v596_v19  ;;  %v837_v23 = vpop.f32.mrb[10].mxu1 }
 0x3a3   :  { %890 = vpow2.f32 %v638_v17  ;;  %v622_v24 = vmax.f32 %v605_v18, -20.0  ;;  %v608_v25 = vadd.f32 %v837_v23, %v706_v60  ;;  %v599_v26 = vpop.f32.mrb[11].mxu1 }
 0x3a4   :  { %892 = vpow2.f32 %v634_v21  ;;  %v620_v27 = vmax.f32 %v597_v22, -20.0  ;;  %v600_v28 = vadd.f32 %v706_v60, %v599_v26 }
 0x3a5   :  { %v630_v29 = vmin.f32 %v622_v24, 2.0  ;;  %v623_v30 = vmax.f32 %v608_v25, -20.0 }
 0x3a6   :  { %v628_v31 = vmin.f32 %v620_v27, 2.0  ;;  %v621_v32 = vmax.f32 %v600_v28, -20.0 }
 0x3a7   :  { %v644_v33 = vmul.f32 1.442695, %v630_v29  ;;  %v631_v34 = vmin.f32 %v623_v30, 2.0 }
 0x3a8   :  { %v640_v35 = vmul.f32 1.442695, %v628_v31  ;;  %v629_v36 = vmin.f32 %v621_v32, 2.0 }
 0x3a9   :  { %894 = vpow2.f32 %v644_v33  ;;  %v646_v38 = vmul.f32 1.442695, %v631_v34 }
 0x3aa   :  { %896 = vpow2.f32 %v640_v35  ;;  %v642_v39 = vmul.f32 1.442695, %v629_v36 }
 0x3ab   :  { %v887_v40 = vpop.eup %886  ;;  %898 = vpow2.f32 %v646_v38 }
 0x3ac   :  { %v889_v41 = vpop.eup %888  ;;  %v650_v42 = vsel %vm1122_vm3, %v887_v40, %v589_v62  ;;  %900 = vpow2.f32 %v642_v39 }
 0x3ad   :  { %v891_v43 = vpop.eup %890  ;;  %658 = vst [vmem:[#allocation7 + $0x10] sm:$0xff] %v650_v42  ;;  %v648_v44 = vsel %vm1122_vm3, %v889_v41, %v581_v0 }
 0x3ae   :  { %v893_v45 = vpop.eup %892  ;;  %656 = vst [vmem:[#allocation7] sm:$0xff] %v648_v44  ;;  %v651_v46 = vsel %vm1122_vm3, %v891_v43, %v592_v3 }
 0x3af   :  { %659 = vst [vmem:[#allocation7 + $0x18] sm:$0xff] %v651_v46  ;;  %v649_v47 = vsel %vm1122_vm3, %v893_v45, %v584_v6 }
 0x3b0   :  { %657 = vst [vmem:[#allocation7 + $0x8] sm:$0xff] %v649_v47 }
 0x3b3   :  { %v895_v48 = vpop.eup %894 }
 0x3b4   :  { %v897_v49 = vpop.eup %896  ;;  %v654_v50 = vsel %vm1122_vm3, %v895_v48, %v605_v18 }
 0x3b5   :  { %v899_v51 = vpop.eup %898  ;;  %662 = vst [vmem:[#allocation7 + $0x30] sm:$0xff] %v654_v50  ;;  %v652_v52 = vsel %vm1122_vm3, %v897_v49, %v597_v22 }
 0x3b6   :  { %v901_v53 = vpop.eup %900  ;;  %660 = vst [vmem:[#allocation7 + $0x20] sm:$0xff] %v652_v52  ;;  %v655_v54 = vsel %vm1122_vm3, %v899_v51, %v608_v25 }
 0x3b7   :  { %663 = vst [vmem:[#allocation7 + $0x38] sm:$0xff] %v655_v54  ;;  %v653_v55 = vsel %vm1122_vm3, %v901_v53, %v600_v28 }
 0x3b8   :  { %661 = vst [vmem:[#allocation7 + $0x28] sm:$0xff] %v653_v55 }
 0x3b9   :  { %957 = shalt.err (!%p954_p6)
}
 0x3ba   :  { %s958_s28 = scalar_lea.hbm %s1163_s9, 1024 }
 0x3bb   :  { %p959_p7 = scmp.ne.s32.totalorder %s1163_s9, %s958_s28  ;;  %p962_p8 = scmp.lt.u32.totalorder %s958_s28, %s1163_s9 }
 0x3bd   :  { %p964_p9 = pnand %p962_p8, %p959_p7 }
 0x3bf   :  { %967 = shalt.err (!%p964_p9)
}
 0x3c0   :  { %s979_s5 = smov 128   ;;  %s980_s10 = smov 8  }
 0x3c1   :  { %675 = dma.vmem_to_hbm [thread:$0]  %s670_s24, 1024, %s1163_s9, [#allocation4], %s979_s5, %s979_s5, %s980_s10  }
 0x3c2   :  { %972 = dma.done.wait [#allocation4], 1024  }
 0x3c3   :  { %973 = vsyncadd [#allocation4], 4294966272 }
 0x3c4   :  { %679 = vsyncpa [#allocation3], 1 }
 0x3c5   :  { %680 = vsyncpa [#allocation6], 1 }
 0x3c6   :  { %681 = vsyncpa [#allocation4], 1 }

// kernel: tpu_custom_call.1
= control target key start
LH: loop header
LB: loop body
LE: loop exit
PB: predicated region body
PF: predicated region fallthrough
CT: control target
= control target key end

     0   :  { %14 = vsyncpa [#allocation3], 0  ;;  %s1154_s0 = inlined_call_operand.vmem [shape: f32[64,16], index: 0, kind: input, shape index: {}]   ;;  %s1155_s1 = inlined_call_operand.vmem [shape: bf16[16,128], index: 1, kind: input, shape index: {}]   ;;  %s1156_s2 = inlined_call_operand.vmem [shape: f32[1,128], index: 2, kind: input, shape index: {}]   ;;  %s1157_s3 = inlined_call_operand.vmem [shape: bf16[128,128], index: 3, kind: input, shape index: {}]   ;;  %s1158_s4 = inlined_call_operand.vmem [shape: f32[1,128], index: 4, kind: input, shape index: {}]   ;;  %s1159_s5 = inlined_call_operand.hbm [shape: bf16[128,128], index: 5, kind: input, shape index: {}]   ;;  %s1160_s6 = inlined_call_operand.vmem [shape: f32[1,128], index: 6, kind: input, shape index: {}]   ;;  %s1161_s7 = inlined_call_operand.hbm [shape: bf16[128,128], index: 7, kind: input, shape index: {}]   ;;  %s1162_s8 = inlined_call_operand.vmem [shape: f32[1,128], index: 8, kind: input, shape index: {}]   ;;  %s1163_s9 = inlined_call_operand.hbm [shape: f32[64,128], index: 9, kind: output, shape index: {}]  }
   0x1   :  { %15 = vsyncpa [#allocation6], 0 }
   0x2   :  { %16 = vsyncpa [#allocation4], 0  ;;  %s974_s30 = smov [#allocation2]   ;;  %s902_s13 = scalar_lea.hbm %s1159_s5, 1024 }
   0x3   :  { %s32_s10 = sshll.u32 %s974_s30, 4  ;;  %p903_p0 = scmp.ne.s32.totalorder %s1159_s5, %s902_s13  ;;  %s33_s10 = int_to_ptr.vmem [resolvable:$true] %s32_s10 }
   0x4   :  { %p906_p1 = scmp.lt.u32.totalorder %s902_s13, %s1159_s5 }
   0x6   :  { %p908_p2 = pnand %p906_p1, %p903_p0 }
   0x8   :  { %911 = shalt.err (!%p908_p2)
}
   0x9   :  { %s912_s18 = scalar_lea.vmem %s33_s10, 1024  ;;  %p917_p4 = scmp.lt.s32.totalorder %s33_s10, %s33_s10 }
   0xa   :  { %p913_p3 = scmp.ne.s32.totalorder %s33_s10, %s912_s18  ;;  %p918_p5 = scmp.lt.s32.totalorder %s912_s18, %s912_s18 }
   0xc   :  { %p919_p6 = por %p918_p5, %p917_p4 }
   0xe   :  { %p920_p7 = pnand %p919_p6, %p913_p3 }
  0x10   :  { %923 = shalt.err (!%p920_p7)
}
  0x11   :  { %s975_s19 = smov 64   ;;  %s976_s20 = smov 4  }
  0x12   :  { %38 = dma.hbm_to_vmem [thread:$0]  %s1159_s5, 1024, %s33_s10, [#allocation3], %s975_s19, %s975_s19, %s976_s20  }
  0x13   :  { %s977_s23 = smov [#allocation5]   ;;  %s924_s27 = scalar_lea.hbm %s1161_s7, 1024 }
  0x14   :  { %s46_s24 = sshll.u32 %s977_s23, 4  ;;  %p925_p8 = scmp.ne.s32.totalorder %s1161_s7, %s924_s27  ;;  %s47_s24 = int_to_ptr.vmem [resolvable:$true] %s46_s24 }
  0x15   :  { %p928_p9 = scmp.lt.u32.totalorder %s924_s27, %s1161_s7 }
  0x17   :  { %p930_p10 = pnand %p928_p9, %p925_p8 }
  0x19   :  { %933 = shalt.err (!%p930_p10)
}
  0x1a   :  { %s934_s12 = scalar_lea.vmem %s47_s24, 1024  ;;  %p939_p12 = scmp.lt.s32.totalorder %s47_s24, %s47_s24 }
  0x1b   :  { %p935_p11 = scmp.ne.s32.totalorder %s47_s24, %s934_s12  ;;  %p940_p13 = scmp.lt.s32.totalorder %s934_s12, %s934_s12 }
  0x1d   :  { %p941_p0 = por %p940_p13, %p939_p12 }
  0x1f   :  { %p942_p1 = pnand %p941_p0, %p935_p11 }
  0x21   :  { %945 = shalt.err (!%p942_p1)
}
  0x22   :  { %52 = dma.hbm_to_vmem [thread:$0]  %s1161_s7, 1024, %s47_s24, [#allocation6], %s975_s19, %s975_s19, %s976_s20  }
  0x23   :  { %968 = dma.done.wait [#allocation3], 1024  }
  0x24   :  { %969 = vsyncadd [#allocation3], 4294966272 }
  0x25   :  { %970 = dma.done.wait [#allocation6], 1024  }
  0x26   :  { %971 = vsyncadd [#allocation6], 4294966272  ;;  %v861_v0 = vld [vmem:[%s1155_s1] sm:$0xff]   ;;  %v63_v2 = vld [vmem:[%s1154_s0 + $0x8] sm:$0xff]  ;;  %vm89_vm0 = vcmask 130048  }
  0x27   :  { %v62_v1 = vld [vmem:[%s1154_s0] sm:$0xff]  ;;  %v64_v3 = vld [vmem:[%s1154_s0 + $0x10] sm:$0xff]  ;;  %756 = vmatprep.subr.bf16.mxu0 %v861_v0  ;;  %v65_v5 = vld [vmem:[%s1154_s0 + $0x18] sm:$0xff] }
  0x28   :  { %v70_v4 = vpack.c.bf16 %v63_v2, %v62_v1  ;;  %v66_v6 = vld [vmem:[%s1154_s0 + $0x20] sm:$0xff]  ;;  %v67_v7 = vld [vmem:[%s1154_s0 + $0x28] sm:$0xff]  ;;  %757 = vmatpush3.bf16.msra.mxu0 %v861_v0  ;;  %v71_v8 = vpack.c.bf16 %v65_v5, %v64_v3  ;;  %v68_v12 = vld [vmem:[%s1154_s0 + $0x30] sm:$0xff] }
  0x29   :  { %v72_v9 = vpack.c.bf16 %v67_v7, %v66_v6  ;;  %v862_v10 = vld [vmem:[%s1157_s3] sm:$0xff]   ;;  %v863_v11 = vld [vmem:[%s1157_s3 + $0x8] sm:$0xff]   ;;  %v69_v13 = vld [vmem:[%s1154_s0 + $0x38] sm:$0xff] }
  0x2a   :  { %758 = vmatprep.mubr.msk.bf16.mxu0 %vm89_vm0, %v70_v4  ;;  %766 = vmatprep.subr.bf16.mxu1 %v862_v10  ;;  %v864_v14 = vld [vmem:[%s1157_s3 + $0x10] sm:$0xff]   ;;  %v73_v15 = vpack.c.bf16 %v69_v13, %v68_v12  ;;  %v865_v16 = vld [vmem:[%s1157_s3 + $0x18] sm:$0xff]   ;;  %v866_v17 = vld [vmem:[%s1157_s3 + $0x20] sm:$0xff]  }
  0x2b   :  { %759 = vmatmul.mubr.msk.bf16.vlgmr.msra.gmra.mrb[0].mxu0 %vm89_vm0, %v71_v8  ;;  %767 = vmatpush3.bf16.msra.mxu1 %v862_v10  ;;  %v867_v18 = vld [vmem:[%s1157_s3 + $0x28] sm:$0xff]   ;;  %v868_v19 = vld [vmem:[%s1157_s3 + $0x30] sm:$0xff]   ;;  %v869_v20 = vld [vmem:[%s1157_s3 + $0x38] sm:$0xff]  }
  0x2c   :  { %762 = vmatprep.mubr.msk.bf16.mxu0 %vm89_vm0, %v72_v9  ;;  %768 = vmatprep.subr.bf16.mxu1 %v863_v11  ;;  %v870_v21 = vld [vmem:[#allocation2] sm:$0xff]   ;;  %v871_v22 = vld [vmem:[#allocation2 + $0x8] sm:$0xff]   ;;  %v872_v23 = vld [vmem:[#allocation2 + $0x10] sm:$0xff]  }
  0x2d   :  { %790 = vmatprep.subr.bf16.mxu0 %v870_v21  ;;  %v873_v24 = vld [vmem:[#allocation2 + $0x18] sm:$0xff]   ;;  %v874_v25 = vld [vmem:[#allocation2 + $0x20] sm:$0xff]   ;;  %v875_v26 = vld [vmem:[#allocation2 + $0x28] sm:$0xff]  }
  0x2e   :  { %791 = vmatpush3.bf16.msra.mxu0 %v870_v21  ;;  %v682_v27 = vld [vmem:[%s1156_s2] ss:$0 sm:$0xff]  ;;  %v876_v56 = vld [vmem:[#allocation2 + $0x30] sm:$0xff]   ;;  %v877_v57 = vld [vmem:[#allocation2 + $0x38] sm:$0xff]  }
  0x2f   :  { %769 = vmatpush3.bf16.msra.mxu1 %v863_v11  ;;  %792 = vmatprep.subr.bf16.mxu0 %v871_v22  ;;  %v878_v58 = vld [vmem:[#allocation5] sm:$0xff]   ;;  %v879_v59 = vld [vmem:[#allocation5 + $0x8] sm:$0xff]   ;;  %v880_v60 = vld [vmem:[#allocation5 + $0x10] sm:$0xff]  }
  0x30   :  { %770 = vmatprep.subr.bf16.mxu1 %v864_v14  ;;  %v881_v61 = vld [vmem:[#allocation5 + $0x18] sm:$0xff]   ;;  %v882_v62 = vld [vmem:[#allocation5 + $0x20] sm:$0xff]   ;;  %v883_v63 = vld [vmem:[#allocation5 + $0x28] sm:$0xff]  }
  0x31   :  { %v688_v0 = vld [vmem:[%s1158_s4] ss:$0 sm:$0xff] }
  0x32   :  { %793 = vmatpush3.bf16.msra.mxu0 %v871_v22 }
  0x33   :  { %763 = vmatmul.mubr.msk.bf16.gmra.mrb[4].mxu0 %vm89_vm0, %v73_v15  ;;  %771 = vmatpush3.bf16.msra.mxu1 %v864_v14 }
  0x34   :  { %772 = vmatprep.subr.bf16.mxu1 %v865_v16  ;;  %794 = vmatprep.subr.bf16.mxu0 %v872_v23 }
  0x36   :  { %795 = vmatpush3.bf16.msra.mxu0 %v872_v23 }
  0x37   :  { %773 = vmatpush3.bf16.msra.mxu1 %v865_v16  ;;  %796 = vmatprep.subr.bf16.mxu0 %v873_v24 }
  0x38   :  { %774 = vmatprep.subr.bf16.mxu1 %v866_v17 }
  0x3a   :  { %797 = vmatpush3.bf16.msra.mxu0 %v873_v24 }
  0x3b   :  { %775 = vmatpush3.bf16.msra.mxu1 %v866_v17  ;;  %798 = vmatprep.subr.bf16.mxu0 %v874_v25 }
  0x3c   :  { %776 = vmatprep.subr.bf16.mxu1 %v867_v18 }
  0x3e   :  { %799 = vmatpush3.bf16.msra.mxu0 %v874_v25 }
  0x3f   :  { %777 = vmatpush3.bf16.msra.mxu1 %v867_v18  ;;  %800 = vmatprep.subr.bf16.mxu0 %v875_v26 }
  0x40   :  { %778 = vmatprep.subr.bf16.mxu1 %v868_v19 }
  0x42   :  { %801 = vmatpush3.bf16.msra.mxu0 %v875_v26 }
  0x43   :  { %779 = vmatpush3.bf16.msra.mxu1 %v868_v19  ;;  %802 = vmatprep.subr.bf16.mxu0 %v876_v56 }
  0x44   :  { %780 = vmatprep.subr.bf16.mxu1 %v869_v20 }
  0x46   :  { %803 = vmatpush3.bf16.msra.mxu0 %v876_v56 }
  0x47   :  { %781 = vmatpush3.bf16.msra.mxu1 %v869_v20  ;;  %804 = vmatprep.subr.bf16.mxu0 %v877_v57 }
  0x48   :  { %838 = vmatprep.subr.bf16.mxu1 %v878_v58 }
  0x4a   :  { %805 = vmatpush3.bf16.msra.mxu0 %v877_v57 }
  0x4b   :  { %814 = vmatprep.subr.bf16.mxu0 %v878_v58 }
  0xfe   :  { %v760_v28 = vpop.f32.mrb[0].mxu0 }
  0xff   :  { %v145_v29 = vadd.f32 %v760_v28, %v682_v27  ;;  %v136_v30 = vpop.f32.mrb[1].mxu0 }
 0x100   :  { %v137_v31 = vadd.f32 %v682_v27, %v136_v30  ;;  %v761_v32 = vpop.f32.mrb[2].mxu0  ;;  %v885_v30 = vld [vmem:[#allocation5 + $0x38] sm:$0xff]  }
 0x101   :  { %v148_v33 = vadd.f32 %v761_v32, %v682_v27  ;;  %v139_v34 = vpop.f32.mrb[3].mxu0  ;;  %v169_v36 = vmax.f32 %v145_v29, 0.0  ;;  %v884_v29 = vld [vmem:[#allocation5 + $0x30] sm:$0xff]  }
 0x102   :  { %v140_v35 = vadd.f32 %v682_v27, %v139_v34  ;;  %v167_v38 = vmax.f32 %v137_v31, 0.0  ;;  %v697_v31 = vld [vmem:[%s1160_s6] ss:$0 sm:$0xff] }
 0x103   :  { %v170_v37 = vmax.f32 %v148_v33, 0.0 }
 0x104   :  { %v168_v39 = vmax.f32 %v140_v35, 0.0 }
 0x105   :  { %v176_v40 = vpack.c.bf16 %v170_v37, %v169_v36 }
 0x106   :  { %v764_v41 = vpop.f32.mrb[4].mxu0  ;;  %v175_v42 = vpack.c.bf16 %v168_v39, %v167_v38 }
 0x107   :  { %v161_v43 = vadd.f32 %v764_v41, %v682_v27  ;;  %v152_v44 = vpop.f32.mrb[5].mxu0 }
 0x108   :  { %v153_v45 = vadd.f32 %v682_v27, %v152_v44  ;;  %v765_v46 = vpop.f32.mrb[6].mxu0  ;;  %782 = vmatprep.mubr.bf16.mxu1 %v175_v42 }
 0x109   :  { %v164_v47 = vadd.f32 %v765_v46, %v682_v27  ;;  %v155_v48 = vpop.f32.mrb[7].mxu0  ;;  %783 = vmatmul.mubr.bf16.vlgmr.msra.gmra.mrb[0].mxu1 %v176_v40  ;;  %v173_v50 = vmax.f32 %v161_v43, 0.0 }
 0x10a   :  { %v156_v49 = vadd.f32 %v682_v27, %v155_v48  ;;  %v171_v52 = vmax.f32 %v153_v45, 0.0  ;;  %846 = vmatpush3.bf16.msra.mxu1 %v878_v58 }
 0x10b   :  { %v174_v51 = vmax.f32 %v164_v47, 0.0  ;;  %839 = vmatprep.subr.bf16.mxu1 %v879_v59 }
 0x10c   :  { %v172_v53 = vmax.f32 %v156_v49, 0.0 }
 0x10d   :  { %v178_v54 = vpack.c.bf16 %v174_v51, %v173_v50 }
 0x10e   :  { %v177_v55 = vpack.c.bf16 %v172_v53, %v171_v52  ;;  %847 = vmatpush3.bf16.msra.mxu1 %v879_v59 }
 0x10f   :  { %840 = vmatprep.subr.bf16.mxu1 %v880_v60 }
 0x110   :  { %786 = vmatprep.mubr.bf16.mxu1 %v177_v55 }
 0x111   :  { %787 = vmatmul.mubr.bf16.gmra.mrb[4].mxu1 %v178_v54 }
 0x112   :  { %848 = vmatpush3.bf16.msra.mxu1 %v880_v60 }
 0x113   :  { %841 = vmatprep.subr.bf16.mxu1 %v881_v61 }
 0x116   :  { %849 = vmatpush3.bf16.msra.mxu1 %v881_v61 }
 0x117   :  { %842 = vmatprep.subr.bf16.mxu1 %v882_v62 }
 0x11a   :  { %850 = vmatpush3.bf16.msra.mxu1 %v882_v62 }
 0x11b   :  { %843 = vmatprep.subr.bf16.mxu1 %v883_v63 }
 0x11e   :  { %851 = vmatpush3.bf16.msra.mxu1 %v883_v63 }
 0x11f   :  { %844 = vmatprep.subr.bf16.mxu1 %v884_v29 }
 0x122   :  { %852 = vmatpush3.bf16.msra.mxu1 %v884_v29 }
 0x123   :  { %845 = vmatprep.subr.bf16.mxu1 %v885_v30 }
 0x126   :  { %853 = vmatpush3.bf16.msra.mxu1 %v885_v30 }
 0x1dc   :  { %v784_v1 = vpop.f32.mrb[0].mxu1 }
 0x1dd   :  { %v293_v2 = vadd.f32 %v784_v1, %v688_v0  ;;  %v284_v3 = vpop.f32.mrb[1].mxu1 }
 0x1de   :  { %v285_v4 = vadd.f32 %v688_v0, %v284_v3  ;;  %v785_v5 = vpop.f32.mrb[2].mxu1 }
 0x1df   :  { %v296_v6 = vadd.f32 %v785_v5, %v688_v0  ;;  %v287_v7 = vpop.f32.mrb[3].mxu1  ;;  %v317_v9 = vmax.f32 %v293_v2, 0.0 }
 0x1e0   :  { %v288_v8 = vadd.f32 %v688_v0, %v287_v7  ;;  %v315_v11 = vmax.f32 %v285_v4, 0.0 }
 0x1e1   :  { %v318_v10 = vmax.f32 %v296_v6, 0.0 }
 0x1e2   :  { %v316_v12 = vmax.f32 %v288_v8, 0.0 }
 0x1e3   :  { %v324_v13 = vpack.c.bf16 %v318_v10, %v317_v9  ;;  %v611_v9 = vlaneseq }
 0x1e4   :  { %v323_v14 = vpack.c.bf16 %v316_v12, %v315_v11  ;;  %v788_v15 = vpop.f32.mrb[4].mxu1 }
 0x1e5   :  { %v309_v16 = vadd.f32 %v788_v15, %v688_v0  ;;  %v300_v17 = vpop.f32.mrb[5].mxu1 }
 0x1e6   :  { %v301_v18 = vadd.f32 %v688_v0, %v300_v17  ;;  %v789_v19 = vpop.f32.mrb[6].mxu1  ;;  %806 = vmatprep.mubr.bf16.mxu0 %v323_v14 }
 0x1e7   :  { %v312_v20 = vadd.f32 %v789_v19, %v688_v0  ;;  %v303_v21 = vpop.f32.mrb[7].mxu1  ;;  %807 = vmatmul.mubr.bf16.vlgmr.msra.gmra.mrb[8].mxu0 %v324_v13  ;;  %v321_v23 = vmax.f32 %v309_v16, 0.0 }
 0x1e8   :  { %v304_v22 = vadd.f32 %v688_v0, %v303_v21  ;;  %815 = vmatpush3.bf16.msra.mxu0 %v878_v58  ;;  %v319_v25 = vmax.f32 %v301_v18, 0.0 }
 0x1e9   :  { %v322_v24 = vmax.f32 %v312_v20, 0.0  ;;  %816 = vmatprep.subr.bf16.mxu0 %v879_v59  ;;  %v612_v20 = vand.u32 127, %v611_v9 }
 0x1ea   :  { %v320_v26 = vmax.f32 %v304_v22, 0.0 }
 0x1eb   :  { %v326_v27 = vpack.c.bf16 %v322_v24, %v321_v23  ;;  %vm613_vm1 = vcmp.ge.s32.totalorder %v612_v20, 4  ;;  %vm614_vm2 = vcmp.lt.s32.totalorder %v612_v20, 8 }
 0x1ec   :  { %v325_v28 = vpack.c.bf16 %v320_v26, %v319_v25  ;;  %817 = vmatpush3.bf16.msra.mxu0 %v879_v59  ;;  %vm1122_vm3 = vmand %vm613_vm1, %vm614_vm2 }
 0x1ed   :  { %818 = vmatprep.subr.bf16.mxu0 %v880_v60 }
 0x1ee   :  { %810 = vmatprep.mubr.bf16.mxu0 %v325_v28 }
 0x1ef   :  { %811 = vmatmul.mubr.bf16.gmra.mrb[12].mxu0 %v326_v27 }
 0x1f0   :  { %819 = vmatpush3.bf16.msra.mxu0 %v880_v60  ;;  %v706_v60 = vld [vmem:[%s1162_s8] ss:$0 sm:$0xff]  ;;  %s978_s8 = smov [#allocation7]  }
 0x1f1   :  { %820 = vmatprep.subr.bf16.mxu0 %v881_v61  ;;  %s669_s24 = sshll.u32 %s978_s8, 4  ;;  %s670_s24 = int_to_ptr.vmem [resolvable:$true] %s669_s24 }
 0x1f2   :  { %s946_s25 = scalar_lea.vmem %s670_s24, 1024  ;;  %p951_p3 = scmp.lt.s32.totalorder %s670_s24, %s670_s24 }
 0x1f3   :  { %p947_p2 = scmp.ne.s32.totalorder %s670_s24, %s946_s25  ;;  %p952_p4 = scmp.lt.s32.totalorder %s946_s25, %s946_s25 }
 0x1f4   :  { %821 = vmatpush3.bf16.msra.mxu0 %v881_v61 }
 0x1f5   :  { %822 = vmatprep.subr.bf16.mxu0 %v882_v62  ;;  %p953_p5 = por %p952_p4, %p951_p3 }
 0x1f7   :  { %p954_p6 = pnand %p953_p5, %p947_p2 }
 0x1f8   :  { %823 = vmatpush3.bf16.msra.mxu0 %v882_v62 }
 0x1f9   :  { %824 = vmatprep.subr.bf16.mxu0 %v883_v63 }
 0x1fc   :  { %825 = vmatpush3.bf16.msra.mxu0 %v883_v63 }
 0x1fd   :  { %826 = vmatprep.subr.bf16.mxu0 %v884_v29 }
 0x200   :  { %827 = vmatpush3.bf16.msra.mxu0 %v884_v29 }
 0x201   :  { %828 = vmatprep.subr.bf16.mxu0 %v885_v30 }
 0x204   :  { %829 = vmatpush3.bf16.msra.mxu0 %v885_v30 }
 0x2ba   :  { %v808_v32 = vpop.f32.mrb[8].mxu0 }
 0x2bb   :  { %v441_v33 = vadd.f32 %v808_v32, %v697_v31  ;;  %v432_v34 = vpop.f32.mrb[9].mxu0 }
 0x2bc   :  { %v433_v35 = vadd.f32 %v697_v31, %v432_v34  ;;  %v809_v36 = vpop.f32.mrb[10].mxu0 }
 0x2bd   :  { %v444_v37 = vadd.f32 %v809_v36, %v697_v31  ;;  %v435_v38 = vpop.f32.mrb[11].mxu0  ;;  %v465_v40 = vmax.f32 %v441_v33, 0.0 }
 0x2be   :  { %v436_v39 = vadd.f32 %v697_v31, %v435_v38  ;;  %v463_v42 = vmax.f32 %v433_v35, 0.0 }
 0x2bf   :  { %v466_v41 = vmax.f32 %v444_v37, 0.0 }
 0x2c0   :  { %v464_v43 = vmax.f32 %v436_v39, 0.0 }
 0x2c1   :  { %v472_v44 = vpack.c.bf16 %v466_v41, %v465_v40 }
 0x2c2   :  { %v471_v45 = vpack.c.bf16 %v464_v43, %v463_v42  ;;  %v812_v46 = vpop.f32.mrb[12].mxu0 }
 0x2c3   :  { %v457_v47 = vadd.f32 %v812_v46, %v697_v31  ;;  %v448_v48 = vpop.f32.mrb[13].mxu0 }
 0x2c4   :  { %v449_v49 = vadd.f32 %v697_v31, %v448_v48  ;;  %v813_v50 = vpop.f32.mrb[14].mxu0  ;;  %830 = vmatprep.mubr.bf16.mxu0 %v471_v45 }
 0x2c5   :  { %v460_v51 = vadd.f32 %v813_v50, %v697_v31  ;;  %v451_v52 = vpop.f32.mrb[15].mxu0  ;;  %831 = vmatmul.mubr.bf16.vlgmr.msra.gmra.mrb[16].mxu0 %v472_v44  ;;  %v469_v54 = vmax.f32 %v457_v47, 0.0 }
 0x2c6   :  { %v452_v53 = vadd.f32 %v697_v31, %v451_v52  ;;  %v467_v56 = vmax.f32 %v449_v49, 0.0 }
 0x2c7   :  { %v470_v55 = vmax.f32 %v460_v51, 0.0 }
 0x2c8   :  { %v468_v57 = vmax.f32 %v452_v53, 0.0 }
 0x2c9   :  { %v474_v58 = vpack.c.bf16 %v470_v55, %v469_v54 }
 0x2ca   :  { %v473_v59 = vpack.c.bf16 %v468_v57, %v467_v56 }
 0x2cc   :  { %834 = vmatprep.mubr.bf16.mxu1 %v473_v59 }
 0x2cd   :  { %835 = vmatmul.mubr.bf16.vlgmr.msra.gmra.mrb[8].mxu1 %v474_v58 }
 0x398   :  { %v832_v61 = vpop.f32.mrb[16].mxu0 }
 0x399   :  { %v589_v62 = vadd.f32 %v832_v61, %v706_v60  ;;  %v580_v63 = vpop.f32.mrb[17].mxu0 }
 0x39a   :  { %v581_v0 = vadd.f32 %v706_v60, %v580_v63  ;;  %v833_v1 = vpop.f32.mrb[18].mxu0 }
 0x39b   :  { %v618_v2 = vmax.f32 %v589_v62, -20.0  ;;  %v592_v3 = vadd.f32 %v833_v1, %v706_v60  ;;  %v583_v4 = vpop.f32.mrb[19].mxu0 }
 0x39c   :  { %v616_v5 = vmax.f32 %v581_v0, -20.0  ;;  %v584_v6 = vadd.f32 %v706_v60, %v583_v4 }
 0x39d   :  { %v626_v7 = vmin.f32 %v618_v2, 2.0  ;;  %v619_v8 = vmax.f32 %v592_v3, -20.0 }
 0x39e   :  { %v624_v10 = vmin.f32 %v616_v5, 2.0  ;;  %v617_v11 = vmax.f32 %v584_v6, -20.0 }
 0x39f   :  { %v636_v12 = vmul.f32 1.442695, %v626_v7  ;;  %v627_v13 = vmin.f32 %v619_v8, 2.0 }
 0x3a0   :  { %v632_v14 = vmul.f32 1.442695, %v624_v10  ;;  %v625_v15 = vmin.f32 %v617_v11, 2.0  ;;  %v836_v16 = vpop.f32.mrb[8].mxu1 }
 0x3a1   :  { %886 = vpow2.f32 %v636_v12  ;;  %v638_v17 = vmul.f32 1.442695, %v627_v13  ;;  %v605_v18 = vadd.f32 %v836_v16, %v706_v60  ;;  %v596_v19 = vpop.f32.mrb[9].mxu1 }
 0x3a2   :  { %888 = vpow2.f32 %v632_v14  ;;  %v634_v21 = vmul.f32 1.442695, %v625_v15  ;;  %v597_v22 = vadd.f32 %v706_v60, %v596_v19  ;;  %v837_v23 = vpop.f32.mrb[10].mxu1 }
 0x3a3   :  { %890 = vpow2.f32 %v638_v17  ;;  %v622_v24 = vmax.f32 %v605_v18, -20.0  ;;  %v608_v25 = vadd.f32 %v837_v23, %v706_v60  ;;  %v599_v26 = vpop.f32.mrb[11].mxu1 }
 0x3a4   :  { %892 = vpow2.f32 %v634_v21  ;;  %v620_v27 = vmax.f32 %v597_v22, -20.0  ;;  %v600_v28 = vadd.f32 %v706_v60, %v599_v26 }
 0x3a5   :  { %v630_v29 = vmin.f32 %v622_v24, 2.0  ;;  %v623_v30 = vmax.f32 %v608_v25, -20.0 }
 0x3a6   :  { %v628_v31 = vmin.f32 %v620_v27, 2.0  ;;  %v621_v32 = vmax.f32 %v600_v28, -20.0 }
 0x3a7   :  { %v644_v33 = vmul.f32 1.442695, %v630_v29  ;;  %v631_v34 = vmin.f32 %v623_v30, 2.0 }
 0x3a8   :  { %v640_v35 = vmul.f32 1.442695, %v628_v31  ;;  %v629_v36 = vmin.f32 %v621_v32, 2.0 }
 0x3a9   :  { %894 = vpow2.f32 %v644_v33  ;;  %v646_v38 = vmul.f32 1.442695, %v631_v34 }
 0x3aa   :  { %896 = vpow2.f32 %v640_v35  ;;  %v642_v39 = vmul.f32 1.442695, %v629_v36 }
 0x3ab   :  { %v887_v40 = vpop.eup %886  ;;  %898 = vpow2.f32 %v646_v38 }
 0x3ac   :  { %v889_v41 = vpop.eup %888  ;;  %v650_v42 = vsel %vm1122_vm3, %v887_v40, %v589_v62  ;;  %900 = vpow2.f32 %v642_v39 }
 0x3ad   :  { %v891_v43 = vpop.eup %890  ;;  %658 = vst [vmem:[#allocation7 + $0x10] sm:$0xff] %v650_v42  ;;  %v648_v44 = vsel %vm1122_vm3, %v889_v41, %v581_v0 }
 0x3ae   :  { %v893_v45 = vpop.eup %892  ;;  %656 = vst [vmem:[#allocation7] sm:$0xff] %v648_v44  ;;  %v651_v46 = vsel %vm1122_vm3, %v891_v43, %v592_v3 }
 0x3af   :  { %659 = vst [vmem:[#allocation7 + $0x18] sm:$0xff] %v651_v46  ;;  %v649_v47 = vsel %vm1122_vm3, %v893_v45, %v584_v6 }
 0x3b0   :  { %657 = vst [vmem:[#allocation7 + $0x8] sm:$0xff] %v649_v47 }
 0x3b3   :  { %v895_v48 = vpop.eup %894 }
 0x3b4   :  { %v897_v49 = vpop.eup %896  ;;  %v654_v50 = vsel %vm1122_vm3, %v895_v48, %v605_v18 }
 0x3b5   :  { %v899_v51 = vpop.eup %898  ;;  %662 = vst [vmem:[#allocation7 + $0x30] sm:$0xff] %v654_v50  ;;  %v652_v52 = vsel %vm1122_vm3, %v897_v49, %v597_v22 }
 0x3b6   :  { %v901_v53 = vpop.eup %900  ;;  %660 = vst [vmem:[#allocation7 + $0x20] sm:$0xff] %v652_v52  ;;  %v655_v54 = vsel %vm1122_vm3, %v899_v51, %v608_v25 }
 0x3b7   :  { %663 = vst [vmem:[#allocation7 + $0x38] sm:$0xff] %v655_v54  ;;  %v653_v55 = vsel %vm1122_vm3, %v901_v53, %v600_v28 }
 0x3b8   :  { %661 = vst [vmem:[#allocation7 + $0x28] sm:$0xff] %v653_v55 }
 0x3b9   :  { %957 = shalt.err (!%p954_p6)
}
 0x3ba   :  { %s958_s28 = scalar_lea.hbm %s1163_s9, 1024 }
 0x3bb   :  { %p959_p7 = scmp.ne.s32.totalorder %s1163_s9, %s958_s28  ;;  %p962_p8 = scmp.lt.u32.totalorder %s958_s28, %s1163_s9 }
 0x3bd   :  { %p964_p9 = pnand %p962_p8, %p959_p7 }
 0x3bf   :  { %967 = shalt.err (!%p964_p9)
}
 0x3c0   :  { %s979_s5 = smov 128   ;;  %s980_s10 = smov 8  }
 0x3c1   :  { %675 = dma.vmem_to_hbm [thread:$0]  %s670_s24, 1024, %s1163_s9, [#allocation4], %s979_s5, %s979_s5, %s980_s10  }
 0x3c2   :  { %972 = dma.done.wait [#allocation4], 1024  }
 0x3c3   :  { %973 = vsyncadd [#allocation4], 4294966272 }
 0x3c4   :  { %679 = vsyncpa [#allocation3], 1 }
 0x3c5   :  { %680 = vsyncpa [#allocation6], 1 }
 0x3c6   :  { %681 = vsyncpa [#allocation4], 1 }

</bundles_post_ra>
